<compile_context>
chip_gen: v7x
topology: tpu7x:2x2x1
jax: 0.10.0
libtpu: 0.0.40
codegen_flags: <defaults>
</compile_context>

<pallas_src>
import jax
import jax.numpy as jnp
from jax import lax
from jax.experimental import pallas as pl
from jax.experimental.pallas import tpu as pltpu


def _row_tile(n_rows, row_bytes, *, cap=1024, min_steps=8, vmem_budget=4 << 20):
    """Rows per grid step: multiple of 8, aims for >= min_steps steps, and keeps
    a double-buffered input tile well inside v5e/v6e/v7x scoped VMEM."""
    t = -(-n_rows // min_steps)                       # target >= min_steps steps
    t = min(t, cap, max(8, vmem_budget // max(row_bytes, 1)))
    t = max(8, (t // 8) * 8)
    return t


@jax.jit
def han_forward(z, w1, b1, w2, wp, bp):
    """HAN forward minus GATConv.

    z : (N, M, D) float (bf16 recommended for HBM streaming)
    w1: (D, H), b1: (H,) or (1, H)   -- project[0]  (Linear)
    w2: (H, 1)                       -- project[2]  (Linear, no bias)
    wp: (D, C), bp: (C,)             -- predict     (Linear)
    returns (N, C) f32
    """
    N, M, D = z.shape
    H = w1.shape[1]
    C = wp.shape[1]
    MD = M * D

    b1 = b1.reshape(1, H).astype(jnp.float32)
    bp2 = bp.reshape(1, C).astype(jnp.float32)

    # Free, layout-preserving view (row-major collapse of the two minor dims);
    # no HBM copy of z is made anywhere in this function.
    zf = z.reshape(N, MD)
    row_bytes = MD * z.dtype.itemsize

    # ------------------- pass 1: per-metapath score sums -------------------
    tr = _row_tile(N, row_bytes)
    T = pl.cdiv(N, tr)

    def scores_kernel(z_ref, w1_ref, b1_ref, o_ref):
        # z_ref: (tr, M*D); w1_ref: (D, H); b1_ref: (1, H); o_ref: (1, 1, M*H)
        i = pl.program_id(0)
        rows = i * tr + lax.broadcasted_iota(jnp.int32, (tr, 1), 0)
        valid = rows < N                              # mask the ragged tail tile
        zt = z_ref[...].astype(jnp.float32)           # bf16 stream -> f32 compute
        parts = []
        for m in range(M):                            # M is tiny and static
            hm = jnp.tanh(
                jnp.dot(zt[:, m * D:(m + 1) * D], w1_ref[...],
                        preferred_element_type=jnp.float32) + b1_ref[...])
            parts.append(jnp.sum(jnp.where(valid, hm, 0.0), axis=0, keepdims=True))
        o_ref[0] = jnp.concatenate(parts, axis=1)     # (1, M*H), lane-dense

    partials = pl.pallas_call(
        scores_kernel,
        out_shape=jax.ShapeDtypeStruct((T, 1, M * H), jnp.float32),
        grid=(T,),
        in_specs=[
            pl.BlockSpec((tr, MD), lambda i: (i, 0)),
            pl.BlockSpec((D, H), lambda i: (0, 0)),   # resident weights
            pl.BlockSpec((1, H), lambda i: (0, 0)),   # resident bias
        ],
        out_specs=pl.BlockSpec((1, 1, M * H), lambda i: (i, 0, 0)),
        compiler_params=pltpu.CompilerParams(dimension_semantics=("parallel",)),
        cost_estimate=pl.CostEstimate(
            flops=2 * N * M * D * H,
            transcendentals=N * M * H,
            bytes_accessed=N * MD * z.dtype.itemsize + 4 * (D * H + H + T * M * H)),
    )(zf, w1, b1)

    # Tiny finalize inside the same jit: segment-sum over tiles, mean over N
    # (commutes with the linear w2), softmax over metapaths, and fold beta and
    # the predict Linear into one (M*D, C) matrix for pass 2.
    hsum = jnp.sum(partials, axis=(0, 1)).reshape(M, H)        # (M, H)
    w = (hsum @ w2) / N                                        # (M, 1)
    beta = jax.nn.softmax(w, axis=0)                           # (M, 1)
    cmat = (beta.reshape(M, 1, 1) * wp.reshape(1, D, C).astype(jnp.float32)
            ).reshape(MD, C)                                   # kron(beta,I) @ Wp

    # ---------------- pass 2: fused beta-combine + predict -----------------
    tc = _row_tile(N, row_bytes, cap=2048)
    T2 = pl.cdiv(N, tc)

    def combine_predict_kernel(z_ref, c_ref, bp_ref, o_ref):
        # out_tile = z_tile @ (kron(beta, I_D) @ Wp) + bp
        zt = z_ref[...].astype(jnp.float32)
        o_ref[...] = (jnp.dot(zt, c_ref[...], preferred_element_type=jnp.float32)
                      + bp_ref[...]).astype(o_ref.dtype)

    out = pl.pallas_call(
        combine_predict_kernel,
        out_shape=jax.ShapeDtypeStruct((N, C), jnp.float32),
        grid=(T2,),
        in_specs=[
            pl.BlockSpec((tc, MD), lambda i: (i, 0)),
            pl.BlockSpec((MD, C), lambda i: (0, 0)),  # resident fused matrix
            pl.BlockSpec((1, C), lambda i: (0, 0)),   # resident bias
        ],
        out_specs=pl.BlockSpec((tc, C), lambda i: (i, 0)),
        compiler_params=pltpu.CompilerParams(dimension_semantics=("parallel",)),
        cost_estimate=pl.CostEstimate(
            flops=2 * N * MD * C,
            transcendentals=0,
            bytes_accessed=N * MD * z.dtype.itemsize + 4 * (MD * C + C + N * C)),
    )(zf, cmat, bp2)

    return out


def han_forward_ref(z, w1, b1, w2, wp, bp):
    """Pure-JAX reference mirroring the PyTorch forward exactly."""
    w = jnp.mean(jnp.tanh(z @ w1 + b1.reshape(1, -1)) @ w2, axis=0)   # (M, 1)
    beta = jax.nn.softmax(w, axis=0)                                  # (M, 1)
    zsem = jnp.sum(beta[None, :, :] * z, axis=1)                      # (N, D)
    return zsem @ wp + bp.reshape(1, -1)


if __name__ == "__main__":
    # Shapes consistent with the module: M metapaths, in_dim = num_heads *
    # hidden = 8 * 8 = 64, semantic hidden = 128, out_dim = 3 classes.
    # N is deliberately not a multiple of the row tile (exercises masking).
    N, M, D, H, C = 1000, 4, 64, 128, 3

    key = jax.random.PRNGKey(0)
    k_z, k_w1, k_b1, k_w2, k_wp, k_bp = jax.random.split(key, 6)

    z_f32 = jax.random.normal(k_z, (N, M, D), dtype=jnp.float32)
    w1 = jax.random.normal(k_w1, (D, H), dtype=jnp.float32) * 0.1
    b1 = jax.random.normal(k_b1, (1, H), dtype=jnp.float32) * 0.1
    w2 = jax.random.normal(k_w2, (H, 1), dtype=jnp.float32) * 0.1
    wp = jax.random.normal(k_wp, (D, C), dtype=jnp.float32) * 0.1
    bp = jax.random.normal(k_bp, (C,), dtype=jnp.float32) * 0.1

    # In the real pipeline the GAT stack would emit bf16 activations; quantize
    # once here (stands in for the producer) so the kernels stream half the
    # bytes of z.  The reference sees the same quantized values.
    z_bf16 = z_f32.astype(jnp.bfloat16)

    out = jax.block_until_ready(han_forward(z_bf16, w1, b1, w2, wp, bp))
    with jax.default_matmul_precision("float32"):
        ref = jax.block_until_ready(
            han_forward_ref(z_bf16.astype(jnp.float32), w1, b1, w2, wp, bp))

    assert out.shape == (N, C), out.shape
    err = float(jnp.max(jnp.abs(out - ref)))
    # Tolerance covers TPU MXU f32-via-bf16-pass rounding in the matmuls.
    assert jnp.allclose(out, ref, atol=2e-3, rtol=2e-3), err
    print("KERNEL_OK")
</pallas_src>

<mosaic_0001>
module attributes {stable_mosaic.version = 11 : i64} {
  func.func @scores_kernel(%arg0: i32, %arg1: memref<120x256xbf16, #tpu.memory_space<vmem>>, %arg2: memref<64x128xf32, #tpu.memory_space<vmem>>, %arg3: memref<1x128xf32, #tpu.memory_space<vmem>>, %arg4: memref<1x1x512xf32, #tpu.memory_space<vmem>>) attributes {dimension_semantics = [#tpu.dimension_semantics<parallel>], iteration_bounds = array<i64: 9>, scalar_prefetch = 0 : i64, scratch_operands = 0 : i64, tpu.core_type = #tpu.core_type<tc>, window_params = [{transform_indices = @transform_0, window_bounds = array<i64: 120, 256>}, {pipeline_mode = #tpu.pipeline_mode<synchronous>, transform_indices = @transform_1, window_bounds = array<i64: 64, 128>}, {pipeline_mode = #tpu.pipeline_mode<synchronous>, transform_indices = @transform_2, window_bounds = array<i64: 1, 128>}, {transform_indices = @transform_3, window_bounds = array<i64: 1, 1, 512>}]} {
    %c120_i32 = arith.constant 120 : i32
    %0 = arith.muli %arg0, %c120_i32 : i32
    %1 = tpu.iota {dimensions = array<i32: 0>} : vector<120x1xi32>
    %2 = vector.broadcast %0 : i32 to vector<120x1xi32>
    %3 = arith.addi %2, %1 : vector<120x1xi32>
    %c1000_i32 = arith.constant 1000 : i32
    %4 = vector.broadcast %c1000_i32 : i32 to vector<120x1xi32>
    %5 = arith.cmpi slt, %3, %4 : vector<120x1xi32>
    %c0 = arith.constant 0 : index
    %c0_0 = arith.constant 0 : index
    %6 = vector.load %arg1[%c0, %c0_0] : memref<120x256xbf16, #tpu.memory_space<vmem>>, vector<120x256xbf16>
    %7 = arith.extf %6 : vector<120x256xbf16> to vector<120x256xf32>
    %8 = vector.extract_strided_slice %7 {offsets = [0, 0], sizes = [120, 64], strides = [1, 1]} : vector<120x256xf32> to vector<120x64xf32>
    %c0_1 = arith.constant 0 : index
    %c0_2 = arith.constant 0 : index
    %9 = vector.load %arg2[%c0_1, %c0_2] : memref<64x128xf32, #tpu.memory_space<vmem>>, vector<64x128xf32>
    %cst = arith.constant dense<0.000000e+00> : vector<120x128xf32>
    %10 = tpu.matmul %8, %9, %cst {dimension_numbers = #tpu.dot_dimension_numbers<[1], [0], [0], [1], [0, 0, 1, 1], [], []>} : vector<120x64xf32>, vector<64x128xf32>, vector<120x128xf32> -> vector<120x128xf32>
    %c0_3 = arith.constant 0 : index
    %c0_4 = arith.constant 0 : index
    %11 = vector.load %arg3[%c0_3, %c0_4] : memref<1x128xf32, #tpu.memory_space<vmem>>, vector<1x128xf32>
    %12 = vector.broadcast %11 : vector<1x128xf32> to vector<120x128xf32>
    %13 = arith.addf %10, %12 : vector<120x128xf32>
    %14 = math.tanh %13 : vector<120x128xf32>
    %cst_5 = arith.constant 0.000000e+00 : f32
    %15 = vector.shape_cast %5 : vector<120x1xi1> to vector<120x1xi1>
    %16 = vector.broadcast %15 : vector<120x1xi1> to vector<120x128xi1>
    %17 = vector.broadcast %cst_5 : f32 to vector<120x128xf32>
    %18 = arith.select %16, %14, %17 : vector<120x128xi1>, vector<120x128xf32>
    %cst_6 = arith.constant dense<0.000000e+00> : vector<128xf32>
    %19 = vector.multi_reduction <add>, %18, %cst_6 [0] : vector<120x128xf32> to vector<128xf32>
    %20 = vector.shape_cast %19 : vector<128xf32> to vector<1x128xf32>
    %21 = vector.extract_strided_slice %7 {offsets = [0, 64], sizes = [120, 64], strides = [1, 1]} : vector<120x256xf32> to vector<120x64xf32>
    %c0_7 = arith.constant 0 : index
    %c0_8 = arith.constant 0 : index
    %22 = vector.load %arg2[%c0_7, %c0_8] : memref<64x128xf32, #tpu.memory_space<vmem>>, vector<64x128xf32>
    %cst_9 = arith.constant dense<0.000000e+00> : vector<120x128xf32>
    %23 = tpu.matmul %21, %22, %cst_9 {dimension_numbers = #tpu.dot_dimension_numbers<[1], [0], [0], [1], [0, 0, 1, 1], [], []>} : vector<120x64xf32>, vector<64x128xf32>, vector<120x128xf32> -> vector<120x128xf32>
    %c0_10 = arith.constant 0 : index
    %c0_11 = arith.constant 0 : index
    %24 = vector.load %arg3[%c0_10, %c0_11] : memref<1x128xf32, #tpu.memory_space<vmem>>, vector<1x128xf32>
    %25 = vector.broadcast %24 : vector<1x128xf32> to vector<120x128xf32>
    %26 = arith.addf %23, %25 : vector<120x128xf32>
    %27 = math.tanh %26 : vector<120x128xf32>
    %cst_12 = arith.constant 0.000000e+00 : f32
    %28 = vector.shape_cast %5 : vector<120x1xi1> to vector<120x1xi1>
    %29 = vector.broadcast %28 : vector<120x1xi1> to vector<120x128xi1>
    %30 = vector.broadcast %cst_12 : f32 to vector<120x128xf32>
    %31 = arith.select %29, %27, %30 : vector<120x128xi1>, vector<120x128xf32>
    %cst_13 = arith.constant dense<0.000000e+00> : vector<128xf32>
    %32 = vector.multi_reduction <add>, %31, %cst_13 [0] : vector<120x128xf32> to vector<128xf32>
    %33 = vector.shape_cast %32 : vector<128xf32> to vector<1x128xf32>
    %34 = vector.extract_strided_slice %7 {offsets = [0, 128], sizes = [120, 64], strides = [1, 1]} : vector<120x256xf32> to vector<120x64xf32>
    %c0_14 = arith.constant 0 : index
    %c0_15 = arith.constant 0 : index
    %35 = vector.load %arg2[%c0_14, %c0_15] : memref<64x128xf32, #tpu.memory_space<vmem>>, vector<64x128xf32>
    %cst_16 = arith.constant dense<0.000000e+00> : vector<120x128xf32>
    %36 = tpu.matmul %34, %35, %cst_16 {dimension_numbers = #tpu.dot_dimension_numbers<[1], [0], [0], [1], [0, 0, 1, 1], [], []>} : vector<120x64xf32>, vector<64x128xf32>, vector<120x128xf32> -> vector<120x128xf32>
    %c0_17 = arith.constant 0 : index
    %c0_18 = arith.constant 0 : index
    %37 = vector.load %arg3[%c0_17, %c0_18] : memref<1x128xf32, #tpu.memory_space<vmem>>, vector<1x128xf32>
    %38 = vector.broadcast %37 : vector<1x128xf32> to vector<120x128xf32>
    %39 = arith.addf %36, %38 : vector<120x128xf32>
    %40 = math.tanh %39 : vector<120x128xf32>
    %cst_19 = arith.constant 0.000000e+00 : f32
    %41 = vector.shape_cast %5 : vector<120x1xi1> to vector<120x1xi1>
    %42 = vector.broadcast %41 : vector<120x1xi1> to vector<120x128xi1>
    %43 = vector.broadcast %cst_19 : f32 to vector<120x128xf32>
    %44 = arith.select %42, %40, %43 : vector<120x128xi1>, vector<120x128xf32>
    %cst_20 = arith.constant dense<0.000000e+00> : vector<128xf32>
    %45 = vector.multi_reduction <add>, %44, %cst_20 [0] : vector<120x128xf32> to vector<128xf32>
    %46 = vector.shape_cast %45 : vector<128xf32> to vector<1x128xf32>
    %47 = vector.extract_strided_slice %7 {offsets = [0, 192], sizes = [120, 64], strides = [1, 1]} : vector<120x256xf32> to vector<120x64xf32>
    %c0_21 = arith.constant 0 : index
    %c0_22 = arith.constant 0 : index
    %48 = vector.load %arg2[%c0_21, %c0_22] : memref<64x128xf32, #tpu.memory_space<vmem>>, vector<64x128xf32>
    %cst_23 = arith.constant dense<0.000000e+00> : vector<120x128xf32>
    %49 = tpu.matmul %47, %48, %cst_23 {dimension_numbers = #tpu.dot_dimension_numbers<[1], [0], [0], [1], [0, 0, 1, 1], [], []>} : vector<120x64xf32>, vector<64x128xf32>, vector<120x128xf32> -> vector<120x128xf32>
    %c0_24 = arith.constant 0 : index
    %c0_25 = arith.constant 0 : index
    %50 = vector.load %arg3[%c0_24, %c0_25] : memref<1x128xf32, #tpu.memory_space<vmem>>, vector<1x128xf32>
    %51 = vector.broadcast %50 : vector<1x128xf32> to vector<120x128xf32>
    %52 = arith.addf %49, %51 : vector<120x128xf32>
    %53 = math.tanh %52 : vector<120x128xf32>
    %cst_26 = arith.constant 0.000000e+00 : f32
    %54 = vector.shape_cast %5 : vector<120x1xi1> to vector<120x1xi1>
    %55 = vector.broadcast %54 : vector<120x1xi1> to vector<120x128xi1>
    %56 = vector.broadcast %cst_26 : f32 to vector<120x128xf32>
    %57 = arith.select %55, %53, %56 : vector<120x128xi1>, vector<120x128xf32>
    %cst_27 = arith.constant dense<0.000000e+00> : vector<128xf32>
    %58 = vector.multi_reduction <add>, %57, %cst_27 [0] : vector<120x128xf32> to vector<128xf32>
    %59 = vector.shape_cast %58 : vector<128xf32> to vector<1x128xf32>
    %60 = tpu.concatenate %20, %33, %46, %59 in 1 : vector<1x128xf32>, vector<1x128xf32>, vector<1x128xf32>, vector<1x128xf32> -> vector<1x512xf32>
    %c0_28 = arith.constant 0 : index
    %c0_29 = arith.constant 0 : index
    %c0_30 = arith.constant 0 : index
    %61 = vector.load %arg4[%c0_28, %c0_29, %c0_30] : memref<1x1x512xf32, #tpu.memory_space<vmem>>, vector<1x1x512xf32>
    %62 = vector.shape_cast %61 : vector<1x1x512xf32> to vector<1x512xf32>
    %63 = vector.shape_cast %60 : vector<1x512xf32> to vector<1x1x512xf32>
    tpu.vector_store %arg4[%c0_28, %c0_29, %c0_30], %63 {strides = array<i32>} : memref<1x1x512xf32, #tpu.memory_space<vmem>>, vector<1x1x512xf32>,
    return
  }
  func.func @transform_0(%arg0: i32) -> (i32, i32) {
    %c0_i32 = arith.constant 0 : i32
    %c0_i32_0 = arith.constant 0 : i32
    return %arg0, %c0_i32 : i32, i32
  }
  func.func @transform_1(%arg0: i32) -> (i32, i32) {
    %c0_i32 = arith.constant 0 : i32
    %c0_i32_0 = arith.constant 0 : i32
    %c0_i32_1 = arith.constant 0 : i32
    return %c0_i32, %c0_i32_0 : i32, i32
  }
  func.func @transform_2(%arg0: i32) -> (i32, i32) {
    %c0_i32 = arith.constant 0 : i32
    %c0_i32_0 = arith.constant 0 : i32
    %c0_i32_1 = arith.constant 0 : i32
    return %c0_i32, %c0_i32_0 : i32, i32
  }
  func.func @transform_3(%arg0: i32) -> (i32, i32, i32) {
    %c0_i32 = arith.constant 0 : i32
    %c0_i32_0 = arith.constant 0 : i32
    %c0_i32_1 = arith.constant 0 : i32
    return %arg0, %c0_i32, %c0_i32_0 : i32, i32, i32
  }
}

module attributes {stable_mosaic.version = 11 : i64} {
  func.func @combine_predict_kernel(%arg0: i32, %arg1: memref<120x256xbf16, #tpu.memory_space<vmem>>, %arg2: memref<256x3xf32, #tpu.memory_space<vmem>>, %arg3: memref<1x3xf32, #tpu.memory_space<vmem>>, %arg4: memref<120x3xf32, #tpu.memory_space<vmem>>) attributes {dimension_semantics = [#tpu.dimension_semantics<parallel>], iteration_bounds = array<i64: 9>, scalar_prefetch = 0 : i64, scratch_operands = 0 : i64, tpu.core_type = #tpu.core_type<tc>, window_params = [{transform_indices = @transform_0, window_bounds = array<i64: 120, 256>}, {pipeline_mode = #tpu.pipeline_mode<synchronous>, transform_indices = @transform_1, window_bounds = array<i64: 256, 3>}, {pipeline_mode = #tpu.pipeline_mode<synchronous>, transform_indices = @transform_2, window_bounds = array<i64: 1, 3>}, {transform_indices = @transform_3, window_bounds = array<i64: 120, 3>}]} {
    %c0 = arith.constant 0 : index
    %c0_0 = arith.constant 0 : index
    %0 = vector.load %arg1[%c0, %c0_0] : memref<120x256xbf16, #tpu.memory_space<vmem>>, vector<120x256xbf16>
    %1 = arith.extf %0 : vector<120x256xbf16> to vector<120x256xf32>
    %c0_1 = arith.constant 0 : index
    %c0_2 = arith.constant 0 : index
    %2 = vector.load %arg2[%c0_1, %c0_2] : memref<256x3xf32, #tpu.memory_space<vmem>>, vector<256x3xf32>
    %cst = arith.constant dense<0.000000e+00> : vector<120x3xf32>
    %3 = tpu.matmul %1, %2, %cst {dimension_numbers = #tpu.dot_dimension_numbers<[1], [0], [0], [1], [0, 0, 1, 1], [], []>} : vector<120x256xf32>, vector<256x3xf32>, vector<120x3xf32> -> vector<120x3xf32>
    %c0_3 = arith.constant 0 : index
    %c0_4 = arith.constant 0 : index
    %4 = vector.load %arg3[%c0_3, %c0_4] : memref<1x3xf32, #tpu.memory_space<vmem>>, vector<1x3xf32>
    %5 = vector.broadcast %4 : vector<1x3xf32> to vector<120x3xf32>
    %6 = arith.addf %3, %5 : vector<120x3xf32>
    %c0_5 = arith.constant 0 : index
    %c0_6 = arith.constant 0 : index
    %7 = vector.load %arg4[%c0_5, %c0_6] : memref<120x3xf32, #tpu.memory_space<vmem>>, vector<120x3xf32>
    tpu.vector_store %arg4[%c0_5, %c0_6], %6 {strides = array<i32>} : memref<120x3xf32, #tpu.memory_space<vmem>>, vector<120x3xf32>,
    return
  }
  func.func @transform_0(%arg0: i32) -> (i32, i32) {
    %c0_i32 = arith.constant 0 : i32
    %c0_i32_0 = arith.constant 0 : i32
    return %arg0, %c0_i32 : i32, i32
  }
  func.func @transform_1(%arg0: i32) -> (i32, i32) {
    %c0_i32 = arith.constant 0 : i32
    %c0_i32_0 = arith.constant 0 : i32
    %c0_i32_1 = arith.constant 0 : i32
    return %c0_i32, %c0_i32_0 : i32, i32
  }
  func.func @transform_2(%arg0: i32) -> (i32, i32) {
    %c0_i32 = arith.constant 0 : i32
    %c0_i32_0 = arith.constant 0 : i32
    %c0_i32_1 = arith.constant 0 : i32
    return %c0_i32, %c0_i32_0 : i32, i32
  }
  func.func @transform_3(%arg0: i32) -> (i32, i32) {
    %c0_i32 = arith.constant 0 : i32
    %c0_i32_0 = arith.constant 0 : i32
    return %arg0, %c0_i32 : i32, i32
  }
}

</mosaic_0001>

<bundles_post_ra>
// kernel: han_forward.3
= control target key start
LH: loop header
LB: loop body
LE: loop exit
PB: predicated region body
PF: predicated region fallthrough
CT: control target
= control target key end

     0   :  { %s1061_s12 = smov 0   ;;  %s1063_s13 = smov 0   ;;  %s1357_s0 = inlined_call_operand.vmem [shape: bf16[1000,256], index: 0, kind: input, shape index: {}]   ;;  %s1358_s1 = inlined_call_operand.vmem [shape: f32[256,3], index: 1, kind: input, shape index: {}]   ;;  %s1359_s2 = inlined_call_operand.vmem [shape: f32[1,3], index: 2, kind: input, shape index: {}]   ;;  %s1360_s3 = inlined_call_operand.vmem [shape: f32[1000,3], index: 3, kind: output, shape index: {}]  }
   0x1   :  { %s1065_s14 = smov 0  }
   0x2 LB: > { %s1074_s15 = sadd.s32 4294967295, %s1007_s14   ;;  %s1076_s16 = sadd.s32 1, %s1007_s14   ;;  %s1007_s14 = sphi %s1065_s14, %s1367_s14   ;;  %s1003_s13 = sphi %s1063_s13, %s1366_s13   ;;  %s999_s12 = sphi %s1061_s12, %s1365_s12  }
   0x3   : > { %s85_s17 = ssub.s32 %s1007_s14, %s1076_s16  ;;  %s88_s18 = sadd.s32 1, %s1003_s13 }
   0x4   : > { %p86_p0 = scmp.eq.s32.totalorder %s85_s17, 0  ;;  %p98_p1 = scmp.ne.s32.totalorder %s1003_s13, %s999_s12 }
   0x5   : > { %p99_p2 = scmp.eq.s32.totalorder %s1074_s15, 8  ;;  %p716_p3 = scmp.ge.s32.totalorder %s1007_s14, 1 }
   0x6   : > { %s1084_s19 = scalar_select %p86_p0, %s1003_s13, %s88_s18  }
   0x7   : > { %p1086_p4 = por %p99_p2, %p98_p1  ;;  %p149_p5 = scmp.lt.s32.totalorder %s1007_s14, 10 }
   0x9   : > { %p150_p6 = pnand %p716_p3, %p149_p5 }
   0xa   : > { %v261_v0 = vld [vmem:[%s1358_s1 + $0x80] sm:$0xff] (!%p150_p6)  ;;  %v262_v1 = vld [vmem:[%s1358_s1 + $0x88] sm:$0xff] (!%p150_p6)  ;;  %s1100_s27 = smul.u32 (!%p150_p6), 15, %s1074_s15  ;;  %v263_v5 = vld [vmem:[%s1358_s1 + $0x90] sm:$0xff] (!%p150_p6)  ;;  %s175_s5 = sand.u32 (!%p150_p6), 1, %s999_s12   ;;  %vm424_vm0 = vcmask (!%p150_p6), 23552  }
   0xb   : > { %153 = sbr.rel (%p150_p6) target bundleno = 352 (0x160), region = 32  ;;  %v245_v2 = vld [vmem:[%s1358_s1] sm:$0xff] (!%p150_p6)  ;;  %v811_v3 = vpack.c.bf16 (!%p150_p6), %v262_v1, %v261_v0  ;;  %v246_v4 = vld [vmem:[%s1358_s1 + $0x8] sm:$0xff] (!%p150_p6)  ;;  %v264_v6 = vld [vmem:[%s1358_s1 + $0x98] sm:$0xff] (!%p150_p6) }
   0xc   : > { %v813_v7 = vpack.c.bf16 (!%p150_p6), %v246_v4, %v245_v2  ;;  %v815_v8 = vpack.c.bf16 (!%p150_p6), %v264_v6, %v263_v5  ;;  %v247_v9 = vld [vmem:[%s1358_s1 + $0x10] sm:$0xff] (!%p150_p6)  ;;  %v248_v10 = vld [vmem:[%s1358_s1 + $0x18] sm:$0xff] (!%p150_p6)  ;;  %v265_v11 = vld [vmem:[%s1358_s1 + $0xa0] sm:$0xff] (!%p150_p6)  ;;  %p184_p7 = scmp.lt.s32.totalorder (!%p150_p6), %s1100_s27, 124  ;;  %s859_s6 = smul.u32 (!%p150_p6), 120, %s175_s5 }
   0xd   : > { %812 = vmatprep.subr.bf16.mxu0 (!%p150_p6), %v811_v3  ;;  %843 = vmatprep.subr.bf16.mxu1 (!%p150_p6), %v811_v3  ;;  %v266_v12 = vld [vmem:[%s1358_s1 + $0xa8] sm:$0xff] (!%p150_p6)  ;;  %v817_v13 = vpack.c.bf16 (!%p150_p6), %v248_v10, %v247_v9  ;;  %v249_v15 = vld [vmem:[%s1358_s1 + $0x20] sm:$0xff] (!%p150_p6)  ;;  %v267_v17 = vld [vmem:[%s1358_s1 + $0xb0] sm:$0xff] (!%p150_p6) }
   0xe   : > { %814 = vmatpush3.bf16.msra.mxu0 (!%p150_p6), %v813_v7  ;;  %851 = vmatpush3.bf16.msra.mxu1 (!%p150_p6), %v813_v7  ;;  %v819_v14 = vpack.c.bf16 (!%p150_p6), %v266_v12, %v265_v11  ;;  %v250_v16 = vld [vmem:[%s1358_s1 + $0x28] sm:$0xff] (!%p150_p6)  ;;  %v268_v18 = vld [vmem:[%s1358_s1 + $0xb8] sm:$0xff] (!%p150_p6)  ;;  %v251_v21 = vld [vmem:[%s1358_s1 + $0x30] sm:$0xff] (!%p150_p6)  ;;  %s1219_s12 = scalar_lea.vmem (!%p150_p6), [#allocation2], %s859_s6  }
   0xf   : > { %816 = vmatprep.subr.bf16.mxu0 (!%p150_p6), %v815_v8  ;;  %844 = vmatprep.subr.bf16.mxu1 (!%p150_p6), %v815_v8  ;;  %v821_v19 = vpack.c.bf16 (!%p150_p6), %v250_v16, %v249_v15  ;;  %v823_v20 = vpack.c.bf16 (!%p150_p6), %v268_v18, %v267_v17  ;;  %v252_v22 = vld [vmem:[%s1358_s1 + $0x38] sm:$0xff] (!%p150_p6)  ;;  %v269_v23 = vld [vmem:[%s1358_s1 + $0xc0] sm:$0xff] (!%p150_p6)  ;;  %v270_v24 = vld [vmem:[%s1358_s1 + $0xc8] sm:$0xff] (!%p150_p6) }
  0x10   : > { %v825_v28 = vpack.c.bf16 (!%p150_p6), %v252_v22, %v251_v21  ;;  %v827_v30 = vpack.c.bf16 (!%p150_p6), %v270_v24, %v269_v23  ;;  %v253_v31 = vld [vmem:[%s1358_s1 + $0x40] sm:$0xff] (!%p150_p6)  ;;  %v254_v32 = vld [vmem:[%s1358_s1 + $0x48] sm:$0xff] (!%p150_p6)  ;;  %v271_v33 = vld [vmem:[%s1358_s1 + $0xd0] sm:$0xff] (!%p150_p6) }
  0x11   : > { %v272_v34 = vld [vmem:[%s1358_s1 + $0xd8] sm:$0xff] (!%p150_p6)  ;;  %v829_v35 = vpack.c.bf16 (!%p150_p6), %v254_v32, %v253_v31  ;;  %v255_v37 = vld [vmem:[%s1358_s1 + $0x50] sm:$0xff] (!%p150_p6)  ;;  %v273_v39 = vld [vmem:[%s1358_s1 + $0xe0] sm:$0xff] (!%p150_p6) }
  0x12   : > { %s185_s21 = scalar_select %p184_p7, %s1100_s27, 124  ;;  %818 = vmatpush3.bf16.msra.mxu0 %v817_v13  ;;  %852 = vmatpush3.bf16.msra.mxu1 %v817_v13  ;;  %v831_v36 = vpack.c.bf16 %v272_v34, %v271_v33  ;;  %v256_v38 = vld [vmem:[%s1358_s1 + $0x58] sm:$0xff]  ;;  %v274_v40 = vld [vmem:[%s1358_s1 + $0xe8] sm:$0xff]  ;;  %v257_v43 = vld [vmem:[%s1358_s1 + $0x60] sm:$0xff] }
  0x13   : > { %820 = vmatprep.subr.bf16.mxu0 %v819_v14  ;;  %845 = vmatprep.subr.bf16.mxu1 %v819_v14  ;;  %v833_v41 = vpack.c.bf16 %v256_v38, %v255_v37  ;;  %v835_v42 = vpack.c.bf16 %v274_v40, %v273_v39  ;;  %v258_v44 = vld [vmem:[%s1358_s1 + $0x68] sm:$0xff]  ;;  %v275_v45 = vld [vmem:[%s1358_s1 + $0xf0] sm:$0xff]  ;;  %v276_v46 = vld [vmem:[%s1358_s1 + $0xf8] sm:$0xff]  ;;  %s733_s10 = smul.u32 (%p1086_p4), 120, %s1074_s15 }
  0x14   : > { %s732_s4 = sshll.u32 %s185_s21, 3  ;;  %v837_v47 = vpack.c.bf16 %v258_v44, %v257_v43  ;;  %v839_v48 = vpack.c.bf16 %v276_v46, %v275_v45  ;;  %v259_v49 = vld [vmem:[%s1358_s1 + $0x70] sm:$0xff]  ;;  %v260_v50 = vld [vmem:[%s1358_s1 + $0x78] sm:$0xff]  ;;  %v1215_v31 = vld [vmem:[%s1359_s2] ss:$0 sm:$0xff] }
  0x15   : > { %s1140_s7 = scalar_lea.vmem %s1357_s0, %s732_s4  ;;  %v841_v51 = vpack.c.bf16 %v260_v50, %v259_v49  ;;  %s1271_s17 = scalar_lea.vmem (%p1086_p4), %s1360_s3, %s733_s10  }
  0x16   : > { %v200_v25 = vld [vmem:[%s1140_s7] sm:$0xff]  ;;  %822 = vmatpush3.bf16.msra.mxu0 %v821_v19  ;;  %853 = vmatpush3.bf16.msra.mxu1 %v821_v19  ;;  %v201_v52 = vld [vmem:[%s1140_s7 + $0x8] sm:$0xff]  ;;  %v202_v58 = vld [vmem:[%s1140_s7 + $0x10] sm:$0xff] }
  0x17   : > { %v216_v26 = vunpack.c.h.bf16 %v200_v25  ;;  %v208_v27 = vld [vmem:[%s1140_s7 + $0x40] sm:$0xff]  ;;  %824 = vmatprep.subr.bf16.mxu0 %v823_v20  ;;  %846 = vmatprep.subr.bf16.mxu1 %v823_v20  ;;  %v209_v53 = vld [vmem:[%s1140_s7 + $0x48] sm:$0xff]  ;;  %v215_v54 = vunpack.c.l.bf16 %v200_v25  ;;  %v218_v56 = vunpack.c.h.bf16 %v201_v52  ;;  %v210_v59 = vld [vmem:[%s1140_s7 + $0x50] sm:$0xff]  ;;  %v217_v60 = vunpack.c.l.bf16 %v201_v52 }
  0x18   : > { %v232_v29 = vunpack.c.h.bf16 %v208_v27  ;;  %v231_v55 = vunpack.c.l.bf16 %v208_v27  ;;  %v234_v57 = vunpack.c.h.bf16 %v209_v53  ;;  %v233_v61 = vunpack.c.l.bf16 %v209_v53  ;;  %v203_v0 = vld [vmem:[%s1140_s7 + $0x18] sm:$0xff]  ;;  %v204_v6 = vld [vmem:[%s1140_s7 + $0x20] sm:$0xff]  ;;  %v205_v12 = vld [vmem:[%s1140_s7 + $0x28] sm:$0xff] }
  0x19   : > { %348 = vmatprep.mubr.f32.mxu0 %v216_v26  ;;  %v220_v62 = vunpack.c.h.bf16 %v202_v58  ;;  %v236_v63 = vunpack.c.h.bf16 %v210_v59  ;;  %v211_v1 = vld [vmem:[%s1140_s7 + $0x58] sm:$0xff]  ;;  %v219_v2 = vunpack.c.l.bf16 %v202_v58  ;;  %v235_v3 = vunpack.c.l.bf16 %v210_v59  ;;  %v212_v7 = vld [vmem:[%s1140_s7 + $0x60] sm:$0xff]  ;;  %v213_v13 = vld [vmem:[%s1140_s7 + $0x68] sm:$0xff] }
  0x1a   : > { %388 = vmatprep.mubr.f32.mxu1 %v232_v29  ;;  %826 = vmatpush3.bf16.msra.mxu0 %v825_v28  ;;  %v222_v4 = vunpack.c.h.bf16 %v203_v0  ;;  %v238_v5 = vunpack.c.h.bf16 %v211_v1  ;;  %v221_v8 = vunpack.c.l.bf16 %v203_v0  ;;  %v237_v9 = vunpack.c.l.bf16 %v211_v1  ;;  %v206_v18 = vld [vmem:[%s1140_s7 + $0x30] sm:$0xff]  ;;  %v207_v24 = vld [vmem:[%s1140_s7 + $0x38] sm:$0xff] }
  0x1b   : > { %854 = vmatpush3.bf16.msra.mxu1 %v825_v28  ;;  %828 = vmatprep.subr.bf16.mxu0 %v827_v30  ;;  %v224_v10 = vunpack.c.h.bf16 %v204_v6  ;;  %v240_v11 = vunpack.c.h.bf16 %v212_v7  ;;  %v223_v14 = vunpack.c.l.bf16 %v204_v6  ;;  %v239_v15 = vunpack.c.l.bf16 %v212_v7  ;;  %v214_v19 = vld [vmem:[%s1140_s7 + $0x70] sm:$0xff]  ;;  %s448_s7 = ssub.s32 (%p1086_p4), 125, %s1100_s27 }
  0x1c   : > { %847 = vmatprep.subr.bf16.mxu1 %v827_v30  ;;  %v226_v16 = vunpack.c.h.bf16 %v205_v12  ;;  %v242_v17 = vunpack.c.h.bf16 %v213_v13  ;;  %v225_v20 = vunpack.c.l.bf16 %v205_v12  ;;  %v241_v21 = vunpack.c.l.bf16 %v213_v13  ;;  %p449_p8 = scmp.lt.s32.totalorder (%p1086_p4), %s448_s7, 15 }
  0x1d   : > { %v228_v22 = vunpack.c.h.bf16 %v206_v18  ;;  %v244_v23 = vunpack.c.h.bf16 %v214_v19  ;;  %v227_v25 = vunpack.c.l.bf16 %v206_v18  ;;  %v243_v26 = vunpack.c.l.bf16 %v214_v19 }
  0x1e   : > { %830 = vmatpush3.bf16.msra.mxu0 %v829_v35  ;;  %v230_v27 = vunpack.c.h.bf16 %v207_v24  ;;  %v229_v28 = vunpack.c.l.bf16 %v207_v24 }
  0x1f   : > { %855 = vmatpush3.bf16.msra.mxu1 %v829_v35  ;;  %832 = vmatprep.subr.bf16.mxu0 %v831_v36 }
  0x20   : > { %848 = vmatprep.subr.bf16.mxu1 %v831_v36 }
  0x22   : > { %834 = vmatpush3.bf16.msra.mxu0 %v833_v41 }
  0x23   : > { %856 = vmatpush3.bf16.msra.mxu1 %v833_v41  ;;  %836 = vmatprep.subr.bf16.mxu0 %v835_v42 }
  0x24   : > { %849 = vmatprep.subr.bf16.mxu1 %v835_v42 }
  0x26   : > { %838 = vmatpush3.bf16.msra.mxu0 %v837_v47 }
  0x27   : > { %857 = vmatpush3.bf16.msra.mxu1 %v837_v47  ;;  %840 = vmatprep.subr.bf16.mxu0 %v839_v48 }
  0x28   : > { %850 = vmatprep.subr.bf16.mxu1 %v839_v48 }
  0x2a   : > { %842 = vmatpush3.bf16.msra.mxu0 %v841_v51 }
  0x2b   : > { %858 = vmatpush3.bf16.msra.mxu1 %v841_v51 }
  0x2d   : > { %349 = vmatmul.mubr.f32.vlgmr.msra.gmra.mrb[0].mxu0 %v215_v54 }
  0x2e   : > { %389 = vmatmul.mubr.f32.vlgmr.msra.gmra.mrb[0].mxu1 %v231_v55  ;;  %353 = vmatprep.mubr.f32.mxu0 %v218_v56 }
  0x2f   : > { %393 = vmatprep.mubr.f32.mxu1 %v234_v57 }
  0x31   : > { %354 = vmatmul.mubr.f32.gmra.mrb[2].mxu0 %v217_v60 }
  0x32   : > { %394 = vmatmul.mubr.f32.gmra.mrb[2].mxu1 %v233_v61  ;;  %358 = vmatprep.mubr.f32.mxu0 %v220_v62 }
  0x33   : > { %398 = vmatprep.mubr.f32.mxu1 %v236_v63 }
  0x35   : > { %359 = vmatmul.mubr.f32.gmra.mrb[4].mxu0 %v219_v2 }
  0x36   : > { %399 = vmatmul.mubr.f32.gmra.mrb[4].mxu1 %v235_v3  ;;  %363 = vmatprep.mubr.f32.mxu0 %v222_v4 }
  0x37   : > { %403 = vmatprep.mubr.f32.mxu1 %v238_v5 }
  0x39   : > { %364 = vmatmul.mubr.f32.gmra.mrb[6].mxu0 %v221_v8 }
  0x3a   : > { %404 = vmatmul.mubr.f32.gmra.mrb[6].mxu1 %v237_v9  ;;  %368 = vmatprep.mubr.f32.mxu0 %v224_v10 }
  0x3b   : > { %408 = vmatprep.mubr.f32.mxu1 %v240_v11 }
  0x3d   : > { %369 = vmatmul.mubr.f32.gmra.mrb[8].mxu0 %v223_v14 }
  0x3e   : > { %409 = vmatmul.mubr.f32.gmra.mrb[8].mxu1 %v239_v15  ;;  %373 = vmatprep.mubr.f32.mxu0 %v226_v16 }
  0x3f   : > { %413 = vmatprep.mubr.f32.mxu1 %v242_v17 }
  0x41   : > { %374 = vmatmul.mubr.f32.gmra.mrb[10].mxu0 %v225_v20 }
  0x42   : > { %414 = vmatmul.mubr.f32.gmra.mrb[10].mxu1 %v241_v21  ;;  %378 = vmatprep.mubr.f32.mxu0 %v228_v22 }
  0x43   : > { %418 = vmatprep.mubr.f32.mxu1 %v244_v23 }
  0x45   : > { %379 = vmatmul.mubr.f32.gmra.mrb[12].mxu0 %v227_v25 }
  0x46   : > { %419 = vmatmul.mubr.f32.gmra.mrb[12].mxu1 %v243_v26  ;;  %383 = vmatprep.mubr.f32.mxu0 %v230_v27 }
  0x49   : > { %384 = vmatmul.mubr.f32.gmra.mrb[14].mxu0 %v229_v28 }
 0x100   : > { %v766_v29 = vpop.f32.mrb[0].mxu0 }
 0x101   : > { %v790_v30 = vpop.f32.mrb[0].mxu1  ;;  %v767_v32 = vpop.f32.mrb[1].mxu0 }
 0x102   : > { %v791_v33 = vpop.f32.mrb[1].mxu1  ;;  %v768_v34 = vadd.f32 %v767_v32, %v766_v29 }
 0x103   : > { %v792_v35 = vadd.f32 %v791_v33, %v790_v30 }
 0x104   : > { %v351_v36 = vadd.f32 %v768_v34, %v1215_v31  ;;  %v769_v37 = vpop.f32.mrb[2].mxu0 }
 0x105   : > { %v391_v38 = vadd.f32 %v792_v35, %v1215_v31  ;;  %v793_v39 = vpop.f32.mrb[2].mxu1  ;;  %v770_v40 = vpop.f32.mrb[3].mxu0 }
 0x106   : > { %v794_v41 = vpop.f32.mrb[3].mxu1  ;;  %425 = vst.msk [vmem:[%s1219_s12] sm:$0xff] %vm424_vm0, %v351_v36  ;;  %v771_v42 = vadd.f32 %v770_v40, %v769_v37 }
 0x107   : > { %433 = vst.msk [vmem:[%s1219_s12 + $0x40] sm:$0xff] %vm424_vm0, %v391_v38  ;;  %v795_v43 = vadd.f32 %v794_v41, %v793_v39 }
 0x108   : > { %v356_v44 = vadd.f32 %v771_v42, %v1215_v31  ;;  %v772_v45 = vpop.f32.mrb[4].mxu0 }
 0x109   : > { %v396_v46 = vadd.f32 %v795_v43, %v1215_v31  ;;  %v796_v47 = vpop.f32.mrb[4].mxu1  ;;  %v773_v48 = vpop.f32.mrb[5].mxu0 }
 0x10a   : > { %v797_v49 = vpop.f32.mrb[5].mxu1  ;;  %426 = vst.msk [vmem:[%s1219_s12 + $0x8] sm:$0xff] %vm424_vm0, %v356_v44  ;;  %v774_v50 = vadd.f32 %v773_v48, %v772_v45 }
 0x10b   : > { %434 = vst.msk [vmem:[%s1219_s12 + $0x48] sm:$0xff] %vm424_vm0, %v396_v46  ;;  %v798_v51 = vadd.f32 %v797_v49, %v796_v47 }
 0x10c   : > { %v361_v52 = vadd.f32 %v774_v50, %v1215_v31  ;;  %v775_v53 = vpop.f32.mrb[6].mxu0 }
 0x10d   : > { %v401_v54 = vadd.f32 %v798_v51, %v1215_v31  ;;  %v799_v55 = vpop.f32.mrb[6].mxu1  ;;  %v776_v56 = vpop.f32.mrb[7].mxu0 }
 0x10e   : > { %v800_v57 = vpop.f32.mrb[7].mxu1  ;;  %427 = vst.msk [vmem:[%s1219_s12 + $0x10] sm:$0xff] %vm424_vm0, %v361_v52  ;;  %v777_v58 = vadd.f32 %v776_v56, %v775_v53 }
 0x10f   : > { %435 = vst.msk [vmem:[%s1219_s12 + $0x50] sm:$0xff] %vm424_vm0, %v401_v54  ;;  %v801_v59 = vadd.f32 %v800_v57, %v799_v55 }
 0x110   : > { %v366_v60 = vadd.f32 %v777_v58, %v1215_v31  ;;  %v778_v61 = vpop.f32.mrb[8].mxu0 }
 0x111   : > { %v406_v62 = vadd.f32 %v801_v59, %v1215_v31  ;;  %v802_v63 = vpop.f32.mrb[8].mxu1  ;;  %v779_v0 = vpop.f32.mrb[9].mxu0 }
 0x112   : > { %v803_v1 = vpop.f32.mrb[9].mxu1  ;;  %428 = vst.msk [vmem:[%s1219_s12 + $0x18] sm:$0xff] %vm424_vm0, %v366_v60  ;;  %v780_v2 = vadd.f32 %v779_v0, %v778_v61 }
 0x113   : > { %436 = vst.msk [vmem:[%s1219_s12 + $0x58] sm:$0xff] %vm424_vm0, %v406_v62  ;;  %v804_v3 = vadd.f32 %v803_v1, %v802_v63 }
 0x114   : > { %v371_v4 = vadd.f32 %v780_v2, %v1215_v31  ;;  %v781_v5 = vpop.f32.mrb[10].mxu0 }
 0x115   : > { %v411_v6 = vadd.f32 %v804_v3, %v1215_v31  ;;  %v805_v7 = vpop.f32.mrb[10].mxu1  ;;  %v782_v8 = vpop.f32.mrb[11].mxu0 }
 0x116   : > { %v806_v9 = vpop.f32.mrb[11].mxu1  ;;  %429 = vst.msk [vmem:[%s1219_s12 + $0x20] sm:$0xff] %vm424_vm0, %v371_v4  ;;  %v783_v10 = vadd.f32 %v782_v8, %v781_v5 }
 0x117   : > { %437 = vst.msk [vmem:[%s1219_s12 + $0x60] sm:$0xff] %vm424_vm0, %v411_v6  ;;  %v807_v11 = vadd.f32 %v806_v9, %v805_v7 }
 0x118   : > { %v376_v12 = vadd.f32 %v783_v10, %v1215_v31  ;;  %v784_v13 = vpop.f32.mrb[12].mxu0 }
 0x119   : > { %v416_v14 = vadd.f32 %v807_v11, %v1215_v31  ;;  %v808_v15 = vpop.f32.mrb[12].mxu1  ;;  %v785_v16 = vpop.f32.mrb[13].mxu0 }
 0x11a   : > { %v809_v17 = vpop.f32.mrb[13].mxu1  ;;  %430 = vst.msk [vmem:[%s1219_s12 + $0x28] sm:$0xff] %vm424_vm0, %v376_v12  ;;  %v786_v18 = vadd.f32 %v785_v16, %v784_v13 }
 0x11b   : > { %438 = vst.msk [vmem:[%s1219_s12 + $0x68] sm:$0xff] %vm424_vm0, %v416_v14  ;;  %v810_v19 = vadd.f32 %v809_v17, %v808_v15 }
 0x11c   : > { %v381_v20 = vadd.f32 %v786_v18, %v1215_v31  ;;  %v787_v21 = vpop.f32.mrb[14].mxu0  ;;  %446 = sbr.rel (!%p1086_p4) target bundleno = 352 (0x160), region = 36 }
 0x11d   : > { %v421_v22 = vadd.f32 %v810_v19, %v1215_v31  ;;  %v788_v23 = vpop.f32.mrb[15].mxu0 }
 0x11e   : > { %431 = vst.msk [vmem:[%s1219_s12 + $0x30] sm:$0xff] %vm424_vm0, %v381_v20  ;;  %v789_v24 = vadd.f32 %v788_v23, %v787_v21 }
 0x11f   : > { %439 = vst.msk [vmem:[%s1219_s12 + $0x70] sm:$0xff] %vm424_vm0, %v421_v22 }
 0x120   : > { %v386_v25 = vadd.f32 %v789_v24, %v1215_v31 }
 0x122   : > { %432 = vst.msk [vmem:[%s1219_s12 + $0x38] sm:$0xff] %vm424_vm0, %v386_v25 }
 0x123   : > { %s1369_s7 = smov (!%p449_p8, %s448_s7), 15 }
 0x124   : > { %s720_s18 = sshll.u32 %s1369_s7, 7 }
 0x125   : > { %p723_p9 = scmp.eq.s32.totalorder %s720_s18, 0 }
 0x126   : > { %949 = sdivrem.u32 (!%p723_p9), %s1369_s7, 15 }
 0x127   : > { %457 = sbr.rel (%p723_p9) target bundleno = 352 (0x160), region = 40 }
 0x12f   : > { %s1277_s20 = spop.drf %949 }
 0x130   : > { %p724_p10 = scmp.le.s32.totalorder %s1277_s20, 0 }
 0x131   : > { %s1362_s15 = smov (!%p724_p10), %s1271_s17  ;;  %s1363_s27 = smov (!%p724_p10), %s1219_s12 }
 0x132   : > { %669 = sbr.rel (%p724_p10) target bundleno = 323 (0x143), region = 116  ;;  %s1286_s21 = smov (!%p724_p10), 0  }
 0x133   : > { %s1288_s22 = smov (!%p724_p10), 0  }
 0x139 LB: >> { %v549_v26 = vld [vmem:[%s1015_s27] sm:$0xff]  ;;  %v551_v27 = vld [vmem:[%s1015_s27 + $0x8] sm:$0xff]  ;;  %v553_v28 = vld [vmem:[%s1015_s27 + $0x10] sm:$0xff]  ;;  %s579_s23 = sadd.s32 1, %s1019_s21  ;;  %s543_s22 = sadd.s32 1, %s1023_s22   ;;  %s1023_s22 = sphi %s1288_s22, %s543_s22   ;;  %s1019_s21 = sphi %s1286_s21, %s1364_s21   ;;  %s1015_s27 = sphi %s1363_s27, %s584_s27   ;;  %s1011_s15 = sphi %s1362_s15, %s585_s15  }
 0x13a   : >> { %550 = vst [vmem:[%s1011_s15] sm:$0xff] %v549_v26  ;;  %552 = vst [vmem:[%s1011_s15 + $0x8] sm:$0xff] %v551_v27  ;;  %v555_v29 = vld [vmem:[%s1015_s27 + $0x18] sm:$0xff]  ;;  %v557_v30 = vld [vmem:[%s1015_s27 + $0x20] sm:$0xff]  ;;  %p580_p11 = scmp.ge.s32.totalorder %s579_s23, %s1277_s20  ;;  %p542_p12 = scmp.ge.s32.totalorder %s543_s22, %s1277_s20 }
 0x13b   : >> { %554 = vst [vmem:[%s1011_s15 + $0x10] sm:$0xff] %v553_v28  ;;  %v559_v31 = vld [vmem:[%s1015_s27 + $0x28] sm:$0xff]  ;;  %556 = vst [vmem:[%s1011_s15 + $0x18] sm:$0xff] %v555_v29  ;;  %v561_v32 = vld [vmem:[%s1015_s27 + $0x30] sm:$0xff] }
 0x13c   : >> { %558 = vst [vmem:[%s1011_s15 + $0x20] sm:$0xff] %v557_v30  ;;  %560 = vst [vmem:[%s1011_s15 + $0x28] sm:$0xff] %v559_v31  ;;  %v563_v33 = vld [vmem:[%s1015_s27 + $0x38] sm:$0xff]  ;;  %v565_v34 = vld [vmem:[%s1015_s27 + $0x40] sm:$0xff]  ;;  %s1371_s23 = smov (%p580_p11, %s579_s23), 0  ;;  %545 = sbr.rel (!%p542_p12) target bundleno = 313 (0x139), region = 122 }
 0x13d   : >> { %562 = vst [vmem:[%s1011_s15 + $0x30] sm:$0xff] %v561_v32  ;;  %564 = vst [vmem:[%s1011_s15 + $0x38] sm:$0xff] %v563_v33  ;;  %v567_v35 = vld [vmem:[%s1015_s27 + $0x48] sm:$0xff]  ;;  %v569_v36 = vld [vmem:[%s1015_s27 + $0x50] sm:$0xff]  ;;  %s582_s24 = smul.u32 120, %s1371_s23  ;;  %s1364_s21 = smov %s1371_s23 }
 0x13e   : >> { %566 = vst [vmem:[%s1011_s15 + $0x40] sm:$0xff] %v565_v34  ;;  %v571_v37 = vld [vmem:[%s1015_s27 + $0x58] sm:$0xff]  ;;  %568 = vst [vmem:[%s1011_s15 + $0x48] sm:$0xff] %v567_v35  ;;  %v573_v38 = vld [vmem:[%s1015_s27 + $0x60] sm:$0xff] }
 0x13f   : >> { %570 = vst [vmem:[%s1011_s15 + $0x50] sm:$0xff] %v569_v36  ;;  %572 = vst [vmem:[%s1011_s15 + $0x58] sm:$0xff] %v571_v37  ;;  %v575_v39 = vld [vmem:[%s1015_s27 + $0x68] sm:$0xff]  ;;  %v577_v40 = vld [vmem:[%s1015_s27 + $0x70] sm:$0xff]  ;;  %s584_s27 = scalar_lea.vmem %s1219_s12, %s582_s24 [#allocation2]  }
 0x140   : >> { %574 = vst [vmem:[%s1011_s15 + $0x60] sm:$0xff] %v573_v38  ;;  %576 = vst [vmem:[%s1011_s15 + $0x68] sm:$0xff] %v575_v39 }
 0x141   : >> { %578 = vst [vmem:[%s1011_s15 + $0x70] sm:$0xff] %v577_v40  ;;  %s585_s15 = scalar_lea.vmem %s1271_s17, %s582_s24  }
 0x143 PF: > { %951 = sdivrem.u32 %s1369_s7, 15 }
 0x144   : > { %s725_s25 = smul.u32 120, %s1277_s20 }
 0x146   : > { %s590_s26 = scalar_lea.vmem %s1219_s12, %s725_s25 [#allocation2]   ;;  %s592_s28 = scalar_lea.vmem %s1271_s17, %s725_s25  }
 0x14c   : > { %s952_s29 = spop.drf %951 }
 0x14d   : > { %p727_p13 = scmp.le.s32.totalorder %s952_s29, 0 }
 0x14e   : > { %s1025_s30 = smov (!%p727_p13), %s592_s28   ;;  %s1029_s4 = smov (!%p727_p13), %s590_s26  }
 0x14f   : > { %683 = sbr.rel (%p727_p13) target bundleno = 352 (0x160), region = 127  ;;  %s1033_s5 = smov (!%p727_p13), 0  }
 0x150   : > { %s1037_s6 = smov (!%p727_p13), 0  }
 0x156 LB: >> { %v602_v41 = vld [vmem:[%s1031_s4] sm:$0xff]  ;;  %s604_s8 = sadd.s32 1, %s1035_s5  ;;  %s596_s6 = sadd.s32 1, %s1039_s6   ;;  %s1039_s6 = sphi %s1037_s6, %s596_s6   ;;  %s1035_s5 = sphi %s1033_s5, %s1034_s5   ;;  %s1031_s4 = sphi %s1029_s4, %s609_s4   ;;  %s1027_s30 = sphi %s1025_s30, %s610_s30  }
 0x157   : >> { %603 = vst [vmem:[%s1027_s30] sm:$0xff] %v602_v41  ;;  %p605_p0 = scmp.ge.s32.totalorder %s604_s8, %s952_s29  ;;  %p595_p1 = scmp.ge.s32.totalorder %s596_s6, %s952_s29 }
 0x159   : >> { %s1373_s8 = smov (%p605_p0, %s604_s8), 0  ;;  %598 = sbr.rel (!%p595_p1) target bundleno = 342 (0x156), region = 133 }
 0x15a   : >> { %s728_s9 = sshll.u32 %s1373_s8, 3  ;;  %s1034_s5 = smov %s1373_s8  }
 0x15b   : >> { %s609_s4 = scalar_lea.vmem %s590_s26, %s728_s9 [#allocation2]   ;;  %s610_s30 = scalar_lea.vmem %s592_s28, %s728_s9  }
 0x160 PF: > { %p10_p2 = scmp.ge.s32.totalorder %s1076_s16, 11   ;;  %s1365_s12 = smov %s1003_s13 }
 0x161   : > { %s1366_s13 = smov %s1084_s19  ;;  %s1367_s14 = smov %s1076_s16 }
 0x162   :  { %12 = sbr.rel (!%p10_p2) target bundleno = 2 (0x2), region = 144 }

// kernel: han_forward.2
= control target key start
LH: loop header
LB: loop body
LE: loop exit
PB: predicated region body
PF: predicated region fallthrough
CT: control target
= control target key end

     0   :  { %s2017_s12 = smov 0   ;;  %s2675_s0 = inlined_call_operand.vmem [shape: bf16[1000,256], index: 0, kind: input, shape index: {}]   ;;  %s2676_s1 = inlined_call_operand.vmem [shape: f32[64,128], index: 1, kind: input, shape index: {}]   ;;  %s2677_s2 = inlined_call_operand.vmem [shape: f32[1,128], index: 2, kind: input, shape index: {}]   ;;  %s2678_s3 = inlined_call_operand.vmem [shape: f32[9,1,512], index: 3, kind: output, shape index: {}]  }
   0x1 LB: > { %s2023_s13 = sadd.s32 4294967295, %s1990_s12   ;;  %p1399_p0 = scmp.ge.s32.totalorder %s1990_s12, 1  ;;  %s1990_s12 = sphi %s2017_s12, %s13_s12  }
   0x2   : > { %p149_p1 = scmp.lt.s32.totalorder %s1990_s12, 10 }
   0x4   : > { %p150_p2 = pnand %p1399_p0, %p149_p1 }
   0x5   : > { %s178_s14 = smul.u32 (!%p150_p2), 15, %s2023_s13  ;;  %v292_v0 = vld [vmem:[%s2676_s1] sm:$0xff] (!%p150_p2)  ;;  %v293_v1 = vld [vmem:[%s2676_s1 + $0x8] sm:$0xff] (!%p150_p2)  ;;  %v294_v2 = vld [vmem:[%s2676_s1 + $0x10] sm:$0xff] (!%p150_p2)  ;;  %v1992_v3 = vmov (!%p150_p2), 0.0|0.0   ;;  %vm1993_vm0 = vmmov (!%p150_p2), 0  }
   0x6   : > { %153 = sbr.rel (%p150_p2) target bundleno = 499 (0x1f3), region = 32  ;;  %1803 = vmatprep.subr.bf16.mxu0 (!%p150_p2), %v1992_v3  ;;  %v2038_v4 = vpack.c.bf16 (!%p150_p2), %v293_v1, %v292_v0  ;;  %v295_v5 = vld [vmem:[%s2676_s1 + $0x18] sm:$0xff] (!%p150_p2)  ;;  %1815 = vmatprep.subr.bf16.mxu1 (!%p150_p2), %v1992_v3  ;;  %v1994_v6 = vmov (!%p150_p2), 0.0   ;;  %v296_v8 = vld [vmem:[%s2676_s1 + $0x20] sm:$0xff] (!%p150_p2)  ;;  %v297_v9 = vld [vmem:[%s2676_s1 + $0x28] sm:$0xff] (!%p150_p2)  ;;  %s1995_s8 = smov (!%p150_p2), 64  }
   0x7   : > { %p184_p3 = scmp.lt.s32.totalorder (!%p150_p2), %s178_s14, 124  ;;  %1575 = vmatprep.mubr.msk.f32.mxu0 (!%p150_p2), %vm1993_vm0, %v1994_v6  ;;  %1636 = vmatprep.mubr.msk.f32.mxu1 (!%p150_p2), %vm1993_vm0, %v1994_v6  ;;  %v2049_v7 = vpack.c.bf16 (!%p150_p2), %v295_v5, %v294_v2  ;;  %v2077_v13 = vpack.c.bf16 (!%p150_p2), %v297_v9, %v296_v8  ;;  %v298_v17 = vld [vmem:[%s2676_s1 + $0x30] sm:$0xff] (!%p150_p2)  ;;  %v299_v18 = vld [vmem:[%s2676_s1 + $0x38] sm:$0xff] (!%p150_p2)  ;;  %vm307_vm1 = vcmask (!%p150_p2), 523264   ;;  %s199_s11 = smul.u32 (!%p150_p2), 120, %s2023_s13 }
   0x8   : > { %1805 = vmatpush3.bf16.msra.mxu0 (!%p150_p2), %v2038_v4  ;;  %1817 = vmatpush3.bf16.msra.mxu1 (!%p150_p2), %v2038_v4  ;;  %v2102_v23 = vpack.c.bf16 (!%p150_p2), %v299_v18, %v298_v17  ;;  %p195_p4 = scmp.lt.s32.totalorder (!%p150_p2), %s2023_s13, 8 }
   0x9   : > { %1806 = vmatprep.subr.bf16.mxu0 (!%p150_p2), %v1992_v3  ;;  %1818 = vmatprep.subr.bf16.mxu1 (!%p150_p2), %v1992_v3 }
   0xc   : > { %1808 = vmatpush3.bf16.msra.mxu0 (!%p150_p2), %v2049_v7  ;;  %1820 = vmatpush3.bf16.msra.mxu1 (!%p150_p2), %v2049_v7 }
   0xd   : > { %s2680_s14 = smov (!%p184_p3, %s178_s14), 124  ;;  %1809 = vmatprep.subr.bf16.mxu0 %v1992_v3  ;;  %1821 = vmatprep.subr.bf16.mxu1 %v1992_v3  ;;  %s2682_s13 = smov (!%p195_p4, %s2023_s13), 8 }
   0xe   : > { %s1466_s27 = sshll.u32 %s2680_s14, 3  ;;  %s1402_s14 = sshll.u32 %s2682_s13, 2 }
   0xf   : > { %s2063_s30 = scalar_lea.vmem %s2675_s0, %s1466_s27  ;;  %s198_s17 = scalar_lea.vmem %s2678_s3, %s1402_s14 }
  0x10   : > { %v2068_v10 = vld [vmem:[%s2063_s30] sm:$0xff]  ;;  %v2071_v11 = vld [vmem:[%s2063_s30 + $0x8] sm:$0xff]  ;;  %v2074_v12 = vld [vmem:[%s2063_s30 + $0x10] sm:$0xff]  ;;  %1811 = vmatpush3.bf16.msra.mxu0 %v2077_v13  ;;  %1823 = vmatpush3.bf16.msra.mxu1 %v2077_v13 }
  0x11   : > { %v262_v14 = vunpack.c.l.bf16 %v2068_v10  ;;  %v266_v15 = vunpack.c.l.bf16 %v2074_v12  ;;  %v2083_v16 = vld [vmem:[%s2063_s30 + $0x18] sm:$0xff]  ;;  %v264_v19 = vunpack.c.l.bf16 %v2071_v11  ;;  %v2096_v21 = vld [vmem:[%s2063_s30 + $0x20] sm:$0xff]  ;;  %v2099_v22 = vld [vmem:[%s2063_s30 + $0x28] sm:$0xff]  ;;  %1812 = vmatprep.subr.bf16.mxu0 %v1992_v3  ;;  %1824 = vmatprep.subr.bf16.mxu1 %v1992_v3  ;;  %v263_v43 = vunpack.c.h.bf16 %v2068_v10 }
  0x12   : > { %v268_v20 = vunpack.c.l.bf16 %v2083_v16  ;;  %v270_v24 = vunpack.c.l.bf16 %v2096_v21  ;;  %v272_v25 = vunpack.c.l.bf16 %v2099_v22  ;;  %v2112_v26 = vld [vmem:[%s2063_s30 + $0x30] sm:$0xff]  ;;  %v2115_v27 = vld [vmem:[%s2063_s30 + $0x38] sm:$0xff]  ;;  %v2126_v30 = vld [vmem:[%s2063_s30 + $0x40] sm:$0xff]  ;;  %v267_v45 = vunpack.c.h.bf16 %v2074_v12 }
  0x13   : > { %573 = vrot.lane.b32.xlu0 %v262_v14, %s1995_s8  ;;  %577 = vrot.lane.b32.xlu1 %v266_v15, %s1995_s8  ;;  %v274_v28 = vunpack.c.l.bf16 %v2112_v26  ;;  %v276_v29 = vunpack.c.l.bf16 %v2115_v27  ;;  %v2129_v31 = vld [vmem:[%s2063_s30 + $0x48] sm:$0xff]  ;;  %v278_v32 = vunpack.c.l.bf16 %v2126_v30  ;;  %v2141_v34 = vld [vmem:[%s2063_s30 + $0x50] sm:$0xff]  ;;  %v265_v46 = vunpack.c.h.bf16 %v2071_v11 }
  0x14   : > { %1814 = vmatpush3.bf16.msra.mxu0 %v2102_v23  ;;  %1826 = vmatpush3.bf16.msra.mxu1 %v2102_v23  ;;  %v280_v33 = vunpack.c.l.bf16 %v2129_v31  ;;  %v2144_v35 = vld [vmem:[%s2063_s30 + $0x58] sm:$0xff]  ;;  %v282_v36 = vunpack.c.l.bf16 %v2141_v34  ;;  %v2156_v38 = vld [vmem:[%s2063_s30 + $0x60] sm:$0xff]  ;;  %v2159_v39 = vld [vmem:[%s2063_s30 + $0x68] sm:$0xff]  ;;  %v269_v47 = vunpack.c.h.bf16 %v2083_v16  ;;  %v271_v48 = vunpack.c.h.bf16 %v2096_v21 }
  0x15   : > { %1827 = vmatprep.subr.bf16.mxu0 %v1992_v3  ;;  %1839 = vmatprep.subr.bf16.mxu1 %v1992_v3  ;;  %v284_v37 = vunpack.c.l.bf16 %v2144_v35  ;;  %v286_v40 = vunpack.c.l.bf16 %v2156_v38  ;;  %v288_v41 = vunpack.c.l.bf16 %v2159_v39  ;;  %v2171_v42 = vld [vmem:[%s2063_s30 + $0x70] sm:$0xff]  ;;  %v273_v49 = vunpack.c.h.bf16 %v2099_v22 }
  0x16   : > { %v290_v44 = vunpack.c.l.bf16 %v2171_v42  ;;  %v275_v50 = vunpack.c.h.bf16 %v2112_v26  ;;  %v277_v51 = vunpack.c.h.bf16 %v2115_v27  ;;  %v279_v52 = vunpack.c.h.bf16 %v2126_v30 }
  0x17   : > { %575 = vrot.lane.b32.xlu0 %v264_v19, %s1995_s8  ;;  %579 = vrot.lane.b32.xlu1 %v268_v20, %s1995_s8  ;;  %v281_v53 = vunpack.c.h.bf16 %v2129_v31  ;;  %v283_v54 = vunpack.c.h.bf16 %v2141_v34  ;;  %v285_v55 = vunpack.c.h.bf16 %v2144_v35  ;;  %v287_v56 = vunpack.c.h.bf16 %v2156_v38 }
  0x18   : > { %1576 = vmatmul.mubr.msk.f32.vlgmr.msra.gmra.mrb[0].mxu0 %vm307_vm1, %v262_v14  ;;  %v289_v57 = vunpack.c.h.bf16 %v2159_v39  ;;  %v291_v58 = vunpack.c.h.bf16 %v2171_v42  ;;  %v2389_v34 = vstv %s199_s11 }
  0x19   : > { %1578 = vmatprep.mubr.msk.f32.mxu0 %vm1993_vm0, %v1994_v6  ;;  %1829 = vmatpush3.bf16.msra.mxu0 %v2038_v4 }
  0x1a   : > { %1830 = vmatprep.subr.bf16.mxu0 %v1992_v3 }
  0x1b   : > { %581 = vrot.lane.b32.xlu0 %v270_v24, %s1995_s8  ;;  %583 = vrot.lane.b32.xlu1 %v272_v25, %s1995_s8 }
  0x1c   : > { %1579 = vmatmul.mubr.msk.f32.gmra.mrb[2].mxu0 %vm307_vm1, %v264_v19 }
  0x1d   : > { %1581 = vmatprep.mubr.msk.f32.mxu0 %vm1993_vm0, %v1994_v6  ;;  %1832 = vmatpush3.bf16.msra.mxu0 %v2049_v7 }
  0x1e   : > { %1833 = vmatprep.subr.bf16.mxu0 %v1992_v3 }
  0x1f   : > { %585 = vrot.lane.b32.xlu0 %v274_v28, %s1995_s8  ;;  %587 = vrot.lane.b32.xlu1 %v276_v29, %s1995_s8 }
  0x20   : > { %1582 = vmatmul.mubr.msk.f32.gmra.mrb[4].mxu0 %vm307_vm1, %v266_v15 }
  0x21   : > { %1584 = vmatprep.mubr.msk.f32.mxu0 %vm1993_vm0, %v1994_v6  ;;  %1835 = vmatpush3.bf16.msra.mxu0 %v2077_v13 }
  0x22   : > { %1836 = vmatprep.subr.bf16.mxu0 %v1992_v3 }
  0x23   : > { %589 = vrot.lane.b32.xlu0 %v278_v32, %s1995_s8  ;;  %591 = vrot.lane.b32.xlu1 %v280_v33, %s1995_s8 }
  0x24   : > { %1585 = vmatmul.mubr.msk.f32.gmra.mrb[6].mxu0 %vm307_vm1, %v268_v20 }
  0x25   : > { %1587 = vmatprep.mubr.msk.f32.mxu0 %vm1993_vm0, %v1994_v6  ;;  %1838 = vmatpush3.bf16.msra.mxu0 %v2102_v23 }
  0x27   : > { %593 = vrot.lane.b32.xlu0 %v282_v36, %s1995_s8  ;;  %595 = vrot.lane.b32.xlu1 %v284_v37, %s1995_s8 }
  0x28   : > { %1588 = vmatmul.mubr.msk.f32.gmra.mrb[8].mxu0 %vm307_vm1, %v270_v24  ;;  %v200_v24 = vlaneseq }
  0x29   : > { %1590 = vmatprep.mubr.msk.f32.mxu0 %vm1993_vm0, %v1994_v6 }
  0x2b   : > { %597 = vrot.lane.b32.xlu0 %v286_v40, %s1995_s8  ;;  %599 = vrot.lane.b32.xlu1 %v288_v41, %s1995_s8 }
  0x2c   : > { %1591 = vmatmul.mubr.msk.f32.gmra.mrb[10].mxu0 %vm307_vm1, %v272_v25 }
  0x2d   : > { %1593 = vmatprep.mubr.msk.f32.mxu0 %vm1993_vm0, %v1994_v6 }
  0x2f   : > { %601 = vrot.lane.b32.xlu0 %v290_v44, %s1995_s8  ;;  %1058 = vrot.lane.b32.xlu1 %v263_v43, %s1995_s8 }
  0x30   : > { %1594 = vmatmul.mubr.msk.f32.gmra.mrb[12].mxu0 %vm307_vm1, %v274_v28 }
  0x31   : > { %1596 = vmatprep.mubr.msk.f32.mxu0 %vm1993_vm0, %v1994_v6 }
  0x33   : > { %1060 = vrot.lane.b32.xlu0 %v265_v46, %s1995_s8  ;;  %1062 = vrot.lane.b32.xlu1 %v267_v45, %s1995_s8 }
  0x34   : > { %1597 = vmatmul.mubr.msk.f32.gmra.mrb[14].mxu0 %vm307_vm1, %v276_v29  ;;  %v2384_v29 = vshrl.u32 %v200_v24, 7 }
  0x35   : > { %1599 = vmatprep.mubr.msk.f32.mxu0 %vm1993_vm0, %v1994_v6 }
  0x36   : > { %v202_v35 = vadd.s32 8, %v2384_v29  ;;  %v2397_v38 = vadd.s32 %v2389_v34, %v2384_v29  ;;  %v203_v42 = vadd.s32 16, %v2384_v29 }
  0x37   : > { %1064 = vrot.lane.b32.xlu0 %v269_v47, %s1995_s8  ;;  %1066 = vrot.lane.b32.xlu1 %v271_v48, %s1995_s8 }
  0x38   : > { %1600 = vmatmul.mubr.msk.f32.gmra.mrb[16].mxu0 %vm307_vm1, %v278_v32  ;;  %vm232_vm2 = vcmp.lt.s32.totalorder %v2397_v38, 1000 }
  0x39   : > { %1602 = vmatprep.mubr.msk.f32.mxu0 %vm1993_vm0, %v1994_v6 }
  0x3b   : > { %1068 = vrot.lane.b32.xlu0 %v273_v49, %s1995_s8  ;;  %1070 = vrot.lane.b32.xlu1 %v275_v50, %s1995_s8 }
  0x3c   : > { %1603 = vmatmul.mubr.msk.f32.gmra.mrb[18].mxu0 %vm307_vm1, %v280_v33 }
  0x3d   : > { %1605 = vmatprep.mubr.msk.f32.mxu0 %vm1993_vm0, %v1994_v6 }
  0x3f   : > { %1072 = vrot.lane.b32.xlu0 %v277_v51, %s1995_s8  ;;  %1074 = vrot.lane.b32.xlu1 %v279_v52, %s1995_s8 }
  0x40   : > { %1606 = vmatmul.mubr.msk.f32.gmra.mrb[20].mxu0 %vm307_vm1, %v282_v36 }
  0x41   : > { %1608 = vmatprep.mubr.msk.f32.mxu0 %vm1993_vm0, %v1994_v6 }
  0x43   : > { %1076 = vrot.lane.b32.xlu0 %v281_v53, %s1995_s8  ;;  %1078 = vrot.lane.b32.xlu1 %v283_v54, %s1995_s8 }
  0x44   : > { %1609 = vmatmul.mubr.msk.f32.gmra.mrb[22].mxu0 %vm307_vm1, %v284_v37 }
  0x45   : > { %1611 = vmatprep.mubr.msk.f32.mxu0 %vm1993_vm0, %v1994_v6 }
  0x47   : > { %1080 = vrot.lane.b32.xlu0 %v285_v55, %s1995_s8  ;;  %1082 = vrot.lane.b32.xlu1 %v287_v56, %s1995_s8 }
  0x48   : > { %1612 = vmatmul.mubr.msk.f32.gmra.mrb[24].mxu0 %vm307_vm1, %v286_v40 }
  0x49   : > { %1614 = vmatprep.mubr.msk.f32.mxu0 %vm1993_vm0, %v1994_v6 }
  0x4b   : > { %1084 = vrot.lane.b32.xlu0 %v289_v57, %s1995_s8  ;;  %1086 = vrot.lane.b32.xlu1 %v291_v58, %s1995_s8 }
  0x4c   : > { %1615 = vmatmul.mubr.msk.f32.gmra.mrb[26].mxu0 %vm307_vm1, %v288_v41  ;;  %v2402_v41 = vadd.s32 %v2389_v34, %v202_v35  ;;  %v210_v35 = vadd.s32 72, %v2384_v29 }
  0x4d   : > { %1617 = vmatprep.mubr.msk.f32.mxu0 %vm1993_vm0, %v1994_v6 }
  0x4e   : > { %vm233_vm3 = vcmp.lt.s32.totalorder %v2402_v41, 1000 }
  0x50   : > { %1618 = vmatmul.mubr.msk.f32.gmra.mrb[28].mxu0 %vm307_vm1, %v290_v44 }
  0x51   : > { %1697 = vmatprep.mubr.msk.f32.mxu0 %vm1993_vm0, %v1994_v6 }
  0x54   : > { %1698 = vmatmul.mubr.msk.f32.vlgmr.msra.gmra.mrb[30].mxu0 %vm307_vm1, %v263_v43 }
  0x55   : > { %1700 = vmatprep.mubr.msk.f32.mxu0 %vm1993_vm0, %v1994_v6 }
  0x58   : > { %1701 = vmatmul.mubr.msk.f32.gmra.mrb[32].mxu0 %vm307_vm1, %v265_v46  ;;  %v204_v46 = vadd.s32 24, %v2384_v29 }
  0x59   : > { %1703 = vmatprep.mubr.msk.f32.mxu0 %vm1993_vm0, %v1994_v6 }
  0x5c   : > { %1704 = vmatmul.mubr.msk.f32.gmra.mrb[34].mxu0 %vm307_vm1, %v267_v45 }
  0x5d   : > { %1706 = vmatprep.mubr.msk.f32.mxu0 %vm1993_vm0, %v1994_v6 }
  0x60   : > { %1707 = vmatmul.mubr.msk.f32.gmra.mrb[36].mxu0 %vm307_vm1, %v269_v47  ;;  %v2410_v47 = vadd.s32 %v2389_v34, %v203_v42 }
  0x61   : > { %1709 = vmatprep.mubr.msk.f32.mxu0 %vm1993_vm0, %v1994_v6 }
  0x62   : > { %vm234_vm4 = vcmp.lt.s32.totalorder %v2410_v47, 1000 }
  0x64   : > { %1710 = vmatmul.mubr.msk.f32.gmra.mrb[38].mxu0 %vm307_vm1, %v271_v48 }
  0x65   : > { %1712 = vmatprep.mubr.msk.f32.mxu0 %vm1993_vm0, %v1994_v6 }
  0x68   : > { %1713 = vmatmul.mubr.msk.f32.gmra.mrb[40].mxu0 %vm307_vm1, %v273_v49 }
  0x69   : > { %1715 = vmatprep.mubr.msk.f32.mxu0 %vm1993_vm0, %v1994_v6 }
  0x6c   : > { %1716 = vmatmul.mubr.msk.f32.gmra.mrb[42].mxu0 %vm307_vm1, %v275_v50 }
  0x6d   : > { %1718 = vmatprep.mubr.msk.f32.mxu0 %vm1993_vm0, %v1994_v6 }
  0x70   : > { %1719 = vmatmul.mubr.msk.f32.gmra.mrb[44].mxu0 %vm307_vm1, %v277_v51 }
  0x71   : > { %1721 = vmatprep.mubr.msk.f32.mxu0 %vm1993_vm0, %v1994_v6 }
  0x74   : > { %1722 = vmatmul.mubr.msk.f32.gmra.mrb[46].mxu0 %vm307_vm1, %v279_v52 }
  0x75   : > { %1724 = vmatprep.mubr.msk.f32.mxu0 %vm1993_vm0, %v1994_v6 }
  0x78   : > { %1725 = vmatmul.mubr.msk.f32.gmra.mrb[48].mxu0 %vm307_vm1, %v281_v53 }
  0x79   : > { %1727 = vmatprep.mubr.msk.f32.mxu0 %vm1993_vm0, %v1994_v6 }
  0x7c   : > { %1728 = vmatmul.mubr.msk.f32.gmra.mrb[50].mxu0 %vm307_vm1, %v283_v54  ;;  %v2418_v54 = vadd.s32 %v2389_v34, %v204_v46  ;;  %v211_v46 = vadd.s32 80, %v2384_v29 }
  0x7d   : > { %1730 = vmatprep.mubr.msk.f32.mxu0 %vm1993_vm0, %v1994_v6 }
  0x7e   : > { %vm235_vm5 = vcmp.lt.s32.totalorder %v2418_v54, 1000 }
  0x80   : > { %1731 = vmatmul.mubr.msk.f32.gmra.mrb[52].mxu0 %vm307_vm1, %v285_v55 }
  0x81   : > { %1733 = vmatprep.mubr.msk.f32.mxu0 %vm1993_vm0, %v1994_v6 }
  0x84   : > { %1734 = vmatmul.mubr.msk.f32.gmra.mrb[54].mxu0 %vm307_vm1, %v287_v56  ;;  %v205_v56 = vadd.s32 32, %v2384_v29 }
  0x85   : > { %v574_v59 = vpop.permute.xlu0 %573  ;;  %v578_v61 = vpop.permute.xlu1 %577  ;;  %1736 = vmatprep.mubr.msk.f32.mxu0 %vm1993_vm0, %v1994_v6 }
  0x86   : > { %1637 = vmatmul.mubr.msk.f32.vlgmr.msra.gmra.mrb[0].mxu1 %vm307_vm1, %v574_v59 }
  0x87   : > { %1841 = vmatpush3.bf16.msra.mxu1 %v2038_v4  ;;  %1639 = vmatprep.mubr.msk.f32.mxu1 %vm1993_vm0, %v1994_v6 }
  0x88   : > { %1842 = vmatprep.subr.bf16.mxu1 %v1992_v3  ;;  %1737 = vmatmul.mubr.msk.f32.gmra.mrb[56].mxu0 %vm307_vm1, %v289_v57 }
  0x89   : > { %v576_v60 = vpop.permute.xlu0 %575  ;;  %1739 = vmatprep.mubr.msk.f32.mxu0 %vm1993_vm0, %v1994_v6  ;;  %v580_v62 = vpop.permute.xlu1 %579 }
  0x8a   : > { %1640 = vmatmul.mubr.msk.f32.gmra.mrb[2].mxu1 %vm307_vm1, %v576_v60 }
  0x8b   : > { %1642 = vmatprep.mubr.msk.f32.mxu1 %vm1993_vm0, %v1994_v6  ;;  %1844 = vmatpush3.bf16.msra.mxu1 %v2049_v7 }
  0x8c   : > { %1845 = vmatprep.subr.bf16.mxu1 %v1992_v3  ;;  %1740 = vmatmul.mubr.msk.f32.gmra.mrb[58].mxu0 %vm307_vm1, %v291_v58 }
  0x8d   : > { %v582_v63 = vpop.permute.xlu0 %581  ;;  %v584_v0 = vpop.permute.xlu1 %583 }
  0x8e   : > { %1643 = vmatmul.mubr.msk.f32.gmra.mrb[4].mxu1 %vm307_vm1, %v578_v61 }
  0x8f   : > { %1645 = vmatprep.mubr.msk.f32.mxu1 %vm1993_vm0, %v1994_v6  ;;  %1847 = vmatpush3.bf16.msra.mxu1 %v2077_v13 }
  0x90   : > { %1848 = vmatprep.subr.bf16.mxu1 %v1992_v3 }
  0x91   : > { %v586_v1 = vpop.permute.xlu0 %585  ;;  %v588_v2 = vpop.permute.xlu1 %587 }
  0x92   : > { %1646 = vmatmul.mubr.msk.f32.gmra.mrb[6].mxu1 %vm307_vm1, %v580_v62 }
  0x93   : > { %1648 = vmatprep.mubr.msk.f32.mxu1 %vm1993_vm0, %v1994_v6  ;;  %1850 = vmatpush3.bf16.msra.mxu1 %v2102_v23  ;;  %v2375_v23 = vld [vmem:[%s2677_s2] ss:$0 sm:$0xff] }
  0x95   : > { %v590_v3 = vpop.permute.xlu0 %589  ;;  %v592_v4 = vpop.permute.xlu1 %591 }
  0x96   : > { %1649 = vmatmul.mubr.msk.f32.gmra.mrb[8].mxu1 %vm307_vm1, %v582_v63  ;;  %v2427_v63 = vadd.s32 %v2389_v34, %v205_v56  ;;  %v212_v56 = vadd.s32 88, %v2384_v29 }
  0x97   : > { %1651 = vmatprep.mubr.msk.f32.mxu1 %vm1993_vm0, %v1994_v6 }
  0x98   : > { %vm236_vm6 = vcmp.lt.s32.totalorder %v2427_v63, 1000 }
  0x99   : > { %v594_v5 = vpop.permute.xlu0 %593  ;;  %v596_v7 = vpop.permute.xlu1 %595 }
  0x9a   : > { %1652 = vmatmul.mubr.msk.f32.gmra.mrb[10].mxu1 %vm307_vm1, %v584_v0  ;;  %v206_v0 = vadd.s32 40, %v2384_v29 }
  0x9b   : > { %1654 = vmatprep.mubr.msk.f32.mxu1 %vm1993_vm0, %v1994_v6 }
  0x9d   : > { %v598_v8 = vpop.permute.xlu0 %597  ;;  %v600_v9 = vpop.permute.xlu1 %599 }
  0x9e   : > { %1655 = vmatmul.mubr.msk.f32.gmra.mrb[12].mxu1 %vm307_vm1, %v586_v1 }
  0x9f   : > { %1657 = vmatprep.mubr.msk.f32.mxu1 %vm1993_vm0, %v1994_v6 }
  0xa1   : > { %v602_v10 = vpop.permute.xlu0 %601  ;;  %v1059_v11 = vpop.permute.xlu1 %1058 }
  0xa2   : > { %1658 = vmatmul.mubr.msk.f32.gmra.mrb[14].mxu1 %vm307_vm1, %v588_v2 }
  0xa3   : > { %1660 = vmatprep.mubr.msk.f32.mxu1 %vm1993_vm0, %v1994_v6 }
  0xa5   : > { %v1061_v12 = vpop.permute.xlu0 %1060  ;;  %v1063_v13 = vpop.permute.xlu1 %1062 }
  0xa6   : > { %1661 = vmatmul.mubr.msk.f32.gmra.mrb[16].mxu1 %vm307_vm1, %v590_v3 }
  0xa7   : > { %1663 = vmatprep.mubr.msk.f32.mxu1 %vm1993_vm0, %v1994_v6 }
  0xa9   : > { %v1065_v14 = vpop.permute.xlu0 %1064  ;;  %v1067_v15 = vpop.permute.xlu1 %1066 }
  0xaa   : > { %1664 = vmatmul.mubr.msk.f32.gmra.mrb[18].mxu1 %vm307_vm1, %v592_v4 }
  0xab   : > { %1666 = vmatprep.mubr.msk.f32.mxu1 %vm1993_vm0, %v1994_v6 }
  0xad   : > { %v1069_v16 = vpop.permute.xlu0 %1068  ;;  %v1071_v17 = vpop.permute.xlu1 %1070 }
  0xae   : > { %1667 = vmatmul.mubr.msk.f32.gmra.mrb[20].mxu1 %vm307_vm1, %v594_v5 }
  0xaf   : > { %1669 = vmatprep.mubr.msk.f32.mxu1 %vm1993_vm0, %v1994_v6 }
  0xb1   : > { %v1073_v18 = vpop.permute.xlu0 %1072  ;;  %v1075_v19 = vpop.permute.xlu1 %1074 }
  0xb2   : > { %1670 = vmatmul.mubr.msk.f32.gmra.mrb[22].mxu1 %vm307_vm1, %v596_v7  ;;  %v207_v7 = vadd.s32 48, %v2384_v29 }
  0xb3   : > { %1672 = vmatprep.mubr.msk.f32.mxu1 %vm1993_vm0, %v1994_v6 }
  0xb5   : > { %v1077_v20 = vpop.permute.xlu0 %1076  ;;  %v1079_v21 = vpop.permute.xlu1 %1078 }
  0xb6   : > { %1673 = vmatmul.mubr.msk.f32.gmra.mrb[24].mxu1 %vm307_vm1, %v598_v8 }
  0xb7   : > { %1675 = vmatprep.mubr.msk.f32.mxu1 %vm1993_vm0, %v1994_v6 }
  0xb9   : > { %v1081_v22 = vpop.permute.xlu0 %1080  ;;  %v1083_v25 = vpop.permute.xlu1 %1082 }
  0xba   : > { %1676 = vmatmul.mubr.msk.f32.gmra.mrb[26].mxu1 %vm307_vm1, %v600_v9  ;;  %v2436_v9 = vadd.s32 %v2389_v34, %v206_v0 }
  0xbb   : > { %1678 = vmatprep.mubr.msk.f32.mxu1 %vm1993_vm0, %v1994_v6 }
  0xbc   : > { %vm237_vm7 = vcmp.lt.s32.totalorder %v2436_v9, 1000 }
  0xbd   : > { %v1085_v30 = vpop.permute.xlu0 %1084  ;;  %v1087_v36 = vpop.permute.xlu1 %1086 }
  0xbe   : > { %1679 = vmatmul.mubr.msk.f32.gmra.mrb[28].mxu1 %vm307_vm1, %v602_v10 }
  0xbf   : > { %1758 = vmatprep.mubr.msk.f32.mxu1 %vm1993_vm0, %v1994_v6 }
  0xc2   : > { %1759 = vmatmul.mubr.msk.f32.vlgmr.msra.gmra.mrb[30].mxu1 %vm307_vm1, %v1059_v11 }
  0xc3   : > { %1761 = vmatprep.mubr.msk.f32.mxu1 %vm1993_vm0, %v1994_v6 }
  0xc6   : > { %1762 = vmatmul.mubr.msk.f32.gmra.mrb[32].mxu1 %vm307_vm1, %v1061_v12 }
  0xc7   : > { %1764 = vmatprep.mubr.msk.f32.mxu1 %vm1993_vm0, %v1994_v6 }
  0xca   : > { %1765 = vmatmul.mubr.msk.f32.gmra.mrb[34].mxu1 %vm307_vm1, %v1063_v13 }
  0xcb   : > { %1767 = vmatprep.mubr.msk.f32.mxu1 %vm1993_vm0, %v1994_v6 }
  0xce   : > { %1768 = vmatmul.mubr.msk.f32.gmra.mrb[36].mxu1 %vm307_vm1, %v1065_v14 }
  0xcf   : > { %1770 = vmatprep.mubr.msk.f32.mxu1 %vm1993_vm0, %v1994_v6 }
  0xd2   : > { %1771 = vmatmul.mubr.msk.f32.gmra.mrb[38].mxu1 %vm307_vm1, %v1067_v15  ;;  %v2442_v15 = vadd.s32 %v2389_v34, %v207_v7 }
  0xd3   : > { %1773 = vmatprep.mubr.msk.f32.mxu1 %vm1993_vm0, %v1994_v6 }
  0xd4   : > { %vm238_vm8 = vcmp.lt.s32.totalorder %v2442_v15, 1000 }
  0xd6   : > { %1774 = vmatmul.mubr.msk.f32.gmra.mrb[40].mxu1 %vm307_vm1, %v1069_v16 }
  0xd7   : > { %1776 = vmatprep.mubr.msk.f32.mxu1 %vm1993_vm0, %v1994_v6 }
  0xda   : > { %1777 = vmatmul.mubr.msk.f32.gmra.mrb[42].mxu1 %vm307_vm1, %v1071_v17  ;;  %v208_v17 = vadd.s32 56, %v2384_v29 }
  0xdb   : > { %1779 = vmatprep.mubr.msk.f32.mxu1 %vm1993_vm0, %v1994_v6 }
  0xde   : > { %1780 = vmatmul.mubr.msk.f32.gmra.mrb[44].mxu1 %vm307_vm1, %v1073_v18 }
  0xdf   : > { %1782 = vmatprep.mubr.msk.f32.mxu1 %vm1993_vm0, %v1994_v6 }
  0xe2   : > { %1783 = vmatmul.mubr.msk.f32.gmra.mrb[46].mxu1 %vm307_vm1, %v1075_v19 }
  0xe3   : > { %1785 = vmatprep.mubr.msk.f32.mxu1 %vm1993_vm0, %v1994_v6 }
  0xe6   : > { %1786 = vmatmul.mubr.msk.f32.gmra.mrb[48].mxu1 %vm307_vm1, %v1077_v20 }
  0xe7   : > { %1788 = vmatprep.mubr.msk.f32.mxu1 %vm1993_vm0, %v1994_v6 }
  0xea   : > { %1789 = vmatmul.mubr.msk.f32.gmra.mrb[50].mxu1 %vm307_vm1, %v1079_v21 }
  0xeb   : > { %1791 = vmatprep.mubr.msk.f32.mxu1 %vm1993_vm0, %v1994_v6  ;;  %v419_v26 = vpop.f32.mrb[0].mxu0 }
  0xec   : > { %v420_v27 = vadd.f32 %v2375_v23, %v419_v26  ;;  %v1577_v28 = vpop.f32.mrb[1].mxu0  ;;  %v2451_v26 = vadd.s32 %v2389_v34, %v208_v17 }
  0xee   : > { %1792 = vmatmul.mubr.msk.f32.gmra.mrb[52].mxu1 %vm307_vm1, %v1081_v22  ;;  %1864 = vtanh.f32 %v420_v27  ;;  %v209_v27 = vadd.s32 64, %v2384_v29  ;;  %vm239_vm9 = vcmp.lt.s32.totalorder %v2451_v26, 1000 }
  0xef   : > { %1794 = vmatprep.mubr.msk.f32.mxu1 %vm1993_vm0, %v1994_v6  ;;  %v424_v31 = vpop.f32.mrb[2].mxu0 }
  0xf0   : > { %v425_v32 = vadd.f32 %v2375_v23, %v424_v31  ;;  %v1580_v33 = vpop.f32.mrb[3].mxu0 }
  0xf2   : > { %1795 = vmatmul.mubr.msk.f32.gmra.mrb[54].mxu1 %vm307_vm1, %v1083_v25  ;;  %1866 = vtanh.f32 %v425_v32 }
  0xf3   : > { %1797 = vmatprep.mubr.msk.f32.mxu1 %vm1993_vm0, %v1994_v6  ;;  %v429_v37 = vpop.f32.mrb[4].mxu0 }
  0xf4   : > { %v430_v39 = vadd.f32 %v2375_v23, %v429_v37  ;;  %v1583_v40 = vpop.f32.mrb[5].mxu0  ;;  %v2460_v37 = vadd.s32 %v2389_v34, %v209_v27 }
  0xf6   : > { %1798 = vmatmul.mubr.msk.f32.gmra.mrb[56].mxu1 %vm307_vm1, %v1085_v30  ;;  %1868 = vtanh.f32 %v430_v39  ;;  %vm240_vm10 = vcmp.lt.s32.totalorder %v2460_v37, 1000 }
  0xf7   : > { %1800 = vmatprep.mubr.msk.f32.mxu1 %vm1993_vm0, %v1994_v6  ;;  %v434_v43 = vpop.f32.mrb[6].mxu0 }
  0xf8   : > { %v1865_v44 = vpop.eup %1864  ;;  %v435_v6 = vadd.f32 %v2375_v23, %v434_v43  ;;  %v1586_v45 = vpop.f32.mrb[7].mxu0 }
  0xf9   : > { %v538_v48 = vsel %vm232_vm2, %v1865_v44, 0.0 }
  0xfa   : > { %1801 = vmatmul.mubr.msk.f32.gmra.mrb[58].mxu1 %vm307_vm1, %v1087_v36  ;;  %1870 = vtanh.f32 %v435_v6  ;;  %v2466_v6 = vadd.s32 %v2389_v34, %v210_v35  ;;  %vm1339_vm1 = vcmp.lt.s32.totalorder %v200_v24, 512 }
  0xfb   : > { %v439_v49 = vpop.f32.mrb[8].mxu0 }
  0xfc   : > { %v1867_v50 = vpop.eup %1866  ;;  %v440_v51 = vadd.f32 %v2375_v23, %v439_v49  ;;  %v1589_v52 = vpop.f32.mrb[9].mxu0  ;;  %vm241_vm11 = vcmp.lt.s32.totalorder %v2466_v6, 1000 }
  0xfd   : > { %v539_v53 = vsel %vm233_vm3, %v1867_v50, 0.0 }
  0xfe   : > { %v553_v55 = vadd.f32 %v539_v53, %v538_v48  ;;  %1872 = vtanh.f32 %v440_v51 }
  0xff   : > { %v444_v57 = vpop.f32.mrb[10].mxu0 }
 0x100   : > { %v1869_v58 = vpop.eup %1868  ;;  %v445_v59 = vadd.f32 %v2375_v23, %v444_v57  ;;  %v1592_v60 = vpop.f32.mrb[11].mxu0 }
 0x101   : > { %v540_v61 = vsel %vm234_vm4, %v1869_v58, 0.0 }
 0x102   : > { %v554_v62 = vadd.f32 %v553_v55, %v540_v61  ;;  %1874 = vtanh.f32 %v445_v59  ;;  %v2475_v55 = vadd.s32 %v2389_v34, %v211_v46 }
 0x103   : > { %v449_v1 = vpop.f32.mrb[12].mxu0 }
 0x104   : > { %v1871_v2 = vpop.eup %1870  ;;  %v450_v3 = vadd.f32 %v2375_v23, %v449_v1  ;;  %v1595_v4 = vpop.f32.mrb[13].mxu0  ;;  %vm242_vm12 = vcmp.lt.s32.totalorder %v2475_v55, 1000  ;;  %v2484_v1 = vadd.s32 %v2389_v34, %v212_v56 }
 0x105   : > { %v541_v5 = vsel %vm235_vm5, %v1871_v2, 0.0 }
 0x106   : > { %v555_v8 = vadd.f32 %v554_v62, %v541_v5  ;;  %1876 = vtanh.f32 %v450_v3  ;;  %v213_v62 = vadd.s32 96, %v2384_v29  ;;  %vm243_vm13 = vcmp.lt.s32.totalorder %v2484_v1, 1000 }
 0x107   : > { %v454_v10 = vpop.f32.mrb[14].mxu0 }
 0x108   : > { %v1873_v11 = vpop.eup %1872  ;;  %v455_v12 = vadd.f32 %v2375_v23, %v454_v10  ;;  %v1598_v13 = vpop.f32.mrb[15].mxu0 }
 0x109   : > { %v542_v14 = vsel %vm236_vm6, %v1873_v11, 0.0  ;;  %v214_v11 = vadd.s32 104, %v2384_v29 }
 0x10a   : > { %v556_v16 = vadd.f32 %v555_v8, %v542_v14  ;;  %1878 = vtanh.f32 %v455_v12  ;;  %v2490_v8 = vadd.s32 %v2389_v34, %v213_v62 }
 0x10b   : > { %v459_v18 = vpop.f32.mrb[16].mxu0 }
 0x10c   : > { %v1875_v19 = vpop.eup %1874  ;;  %v460_v20 = vadd.f32 %v2375_v23, %v459_v18  ;;  %v1601_v21 = vpop.f32.mrb[17].mxu0  ;;  %vm244_vm14 = vcmp.lt.s32.totalorder %v2490_v8, 1000 }
 0x10d   : > { %v543_v22 = vsel %vm237_vm7, %v1875_v19, 0.0  ;;  %v2499_v19 = vadd.s32 %v2389_v34, %v214_v11 }
 0x10e   : > { %v557_v25 = vadd.f32 %v556_v16, %v543_v22  ;;  %1880 = vtanh.f32 %v460_v20  ;;  %v215_v20 = vadd.s32 112, %v2384_v29 }
 0x10f   : > { %v464_v28 = vpop.f32.mrb[18].mxu0  ;;  %vm245_vm15 = vcmp.lt.s32.totalorder %v2499_v19, 1000 }
 0x110   : > { %v1877_v30 = vpop.eup %1876  ;;  %v465_v31 = vadd.f32 %v2375_v23, %v464_v28  ;;  %v1604_v32 = vpop.f32.mrb[19].mxu0 }
 0x111   : > { %v544_v33 = vsel %vm238_vm8, %v1877_v30, 0.0 }
 0x112   : > { %v558_v36 = vadd.f32 %v557_v25, %v544_v33  ;;  %1882 = vtanh.f32 %v465_v31  ;;  %v2507_v31 = vadd.s32 %v2389_v34, %v215_v20 }
 0x113   : > { %v469_v39 = vpop.f32.mrb[20].mxu0 }
 0x114   : > { %v1879_v40 = vpop.eup %1878  ;;  %v470_v42 = vadd.f32 %v2375_v23, %v469_v39  ;;  %v1607_v43 = vpop.f32.mrb[21].mxu0  ;;  %vm246_vm0 = vcmp.lt.s32.totalorder %v2507_v31, 1000 }
 0x115   : > { %v545_v44 = vsel %vm239_vm9, %v1879_v40, 0.0 }
 0x116   : > { %v559_v45 = vadd.f32 %v558_v36, %v545_v44  ;;  %1884 = vtanh.f32 %v470_v42 }
 0x117   : > { %v474_v48 = vpop.f32.mrb[22].mxu0 }
 0x118   : > { %v1881_v49 = vpop.eup %1880  ;;  %v475_v50 = vadd.f32 %v2375_v23, %v474_v48  ;;  %v1610_v51 = vpop.f32.mrb[23].mxu0 }
 0x119   : > { %v546_v52 = vsel %vm240_vm10, %v1881_v49, 0.0 }
 0x11a   : > { %v560_v53 = vadd.f32 %v559_v45, %v546_v52  ;;  %1886 = vtanh.f32 %v475_v50 }
 0x11b   : > { %v479_v57 = vpop.f32.mrb[24].mxu0 }
 0x11c   : > { %v1883_v58 = vpop.eup %1882  ;;  %v480_v59 = vadd.f32 %v2375_v23, %v479_v57  ;;  %v1613_v60 = vpop.f32.mrb[25].mxu0 }
 0x11d   : > { %v547_v61 = vsel %vm241_vm11, %v1883_v58, 0.0 }
 0x11e   : > { %v561_v0 = vadd.f32 %v560_v53, %v547_v61  ;;  %1888 = vtanh.f32 %v480_v59 }
 0x11f   : > { %v484_v2 = vpop.f32.mrb[26].mxu0 }
 0x120   : > { %v1885_v3 = vpop.eup %1884  ;;  %v485_v4 = vadd.f32 %v2375_v23, %v484_v2  ;;  %v1616_v5 = vpop.f32.mrb[27].mxu0 }
 0x121   : > { %v548_v7 = vsel %vm242_vm12, %v1885_v3, 0.0 }
 0x122   : > { %v562_v10 = vadd.f32 %v561_v0, %v548_v7  ;;  %1890 = vtanh.f32 %v485_v4 }
 0x123   : > { %v489_v12 = vpop.f32.mrb[28].mxu0 }
 0x124   : > { %v1887_v13 = vpop.eup %1886  ;;  %v490_v14 = vadd.f32 %v2375_v23, %v489_v12  ;;  %v1619_v16 = vpop.f32.mrb[29].mxu0 }
 0x125   : > { %v549_v17 = vsel %vm243_vm13, %v1887_v13, 0.0 }
 0x126   : > { %v563_v18 = vadd.f32 %v562_v10, %v549_v17  ;;  %1892 = vtanh.f32 %v490_v14 }
 0x127   : > { %v934_v21 = vpop.f32.mrb[30].mxu0 }
 0x128   : > { %v1889_v22 = vpop.eup %1888  ;;  %v935_v25 = vadd.f32 %v2375_v23, %v934_v21  ;;  %v1699_v27 = vpop.f32.mrb[31].mxu0 }
 0x129   : > { %v550_v28 = vsel %vm244_vm14, %v1889_v22, 0.0 }
 0x12a   : > { %v564_v30 = vadd.f32 %v563_v18, %v550_v28  ;;  %1894 = vtanh.f32 %v935_v25 }
 0x12b   : > { %v939_v32 = vpop.f32.mrb[32].mxu0 }
 0x12c   : > { %v1891_v33 = vpop.eup %1890  ;;  %v940_v35 = vadd.f32 %v2375_v23, %v939_v32  ;;  %v1702_v36 = vpop.f32.mrb[33].mxu0 }
 0x12d   : > { %v551_v39 = vsel %vm245_vm15, %v1891_v33, 0.0 }
 0x12e   : > { %v565_v40 = vadd.f32 %v564_v30, %v551_v39  ;;  %1896 = vtanh.f32 %v940_v35 }
 0x12f   : > { %v944_v42 = vpop.f32.mrb[34].mxu0 }
 0x130   : > { %v1893_v43 = vpop.eup %1892  ;;  %v945_v44 = vadd.f32 %v2375_v23, %v944_v42  ;;  %v1705_v45 = vpop.f32.mrb[35].mxu0 }
 0x131   : > { %v552_v34 = vsel %vm246_vm0, %v1893_v43, 0.0 }
 0x132   : > { %v2516_v46 = vadd.f32 %v565_v40, %v552_v34  ;;  %1898 = vtanh.f32 %v945_v44 }
 0x133   : > { %v949_v48 = vpop.f32.mrb[36].mxu0 }
 0x134   : > { %v1895_v49 = vpop.eup %1894  ;;  %v950_v50 = vadd.f32 %v2375_v23, %v949_v48  ;;  %v1708_v51 = vpop.f32.mrb[37].mxu0 }
 0x135   : > { %v1023_v52 = vsel %vm232_vm2, %v1895_v49, 0.0 }
 0x136   : > { %1900 = vtanh.f32 %v950_v50 }
 0x137   : > { %v954_v53 = vpop.f32.mrb[38].mxu0 }
 0x138   : > { %v1897_v56 = vpop.eup %1896  ;;  %v955_v57 = vadd.f32 %v2375_v23, %v954_v53  ;;  %v1711_v58 = vpop.f32.mrb[39].mxu0 }
 0x139   : > { %v1024_v59 = vsel %vm233_vm3, %v1897_v56, 0.0 }
 0x13a   : > { %v1038_v60 = vadd.f32 %v1024_v59, %v1023_v52  ;;  %1902 = vtanh.f32 %v955_v57 }
 0x13b   : > { %v959_v61 = vpop.f32.mrb[40].mxu0 }
 0x13c   : > { %v1899_v62 = vpop.eup %1898  ;;  %v960_v0 = vadd.f32 %v2375_v23, %v959_v61  ;;  %v1714_v2 = vpop.f32.mrb[41].mxu0 }
 0x13d   : > { %v1025_v3 = vsel %vm234_vm4, %v1899_v62, 0.0 }
 0x13e   : > { %v1039_v4 = vadd.f32 %v1038_v60, %v1025_v3  ;;  %1904 = vtanh.f32 %v960_v0 }
 0x13f   : > { %v964_v5 = vpop.f32.mrb[42].mxu0 }
 0x140   : > { %v1901_v7 = vpop.eup %1900  ;;  %v965_v10 = vadd.f32 %v2375_v23, %v964_v5  ;;  %v1717_v11 = vpop.f32.mrb[43].mxu0 }
 0x141   : > { %v1026_v12 = vsel %vm235_vm5, %v1901_v7, 0.0 }
 0x142   : > { %v1040_v13 = vadd.f32 %v1039_v4, %v1026_v12  ;;  %1906 = vtanh.f32 %v965_v10 }
 0x143   : > { %v969_v14 = vpop.f32.mrb[44].mxu0 }
 0x144   : > { %v1903_v16 = vpop.eup %1902  ;;  %v970_v17 = vadd.f32 %v2375_v23, %v969_v14  ;;  %v1720_v18 = vpop.f32.mrb[45].mxu0 }
 0x145   : > { %v1027_v20 = vsel %vm236_vm6, %v1903_v16, 0.0 }
 0x146   : > { %v1041_v21 = vadd.f32 %v1040_v13, %v1027_v20  ;;  %1908 = vtanh.f32 %v970_v17 }
 0x147   : > { %v974_v22 = vpop.f32.mrb[46].mxu0 }
 0x148   : > { %v1905_v25 = vpop.eup %1904  ;;  %v975_v27 = vadd.f32 %v2375_v23, %v974_v22  ;;  %v1723_v28 = vpop.f32.mrb[47].mxu0 }
 0x149   : > { %v1028_v30 = vsel %vm237_vm7, %v1905_v25, 0.0 }
 0x14a   : > { %v1042_v32 = vadd.f32 %v1041_v21, %v1028_v30  ;;  %1910 = vtanh.f32 %v975_v27 }
 0x14b   : > { %v979_v33 = vpop.f32.mrb[48].mxu0 }
 0x14c   : > { %v1907_v35 = vpop.eup %1906  ;;  %v980_v36 = vadd.f32 %v2375_v23, %v979_v33  ;;  %v1726_v39 = vpop.f32.mrb[49].mxu0 }
 0x14d   : > { %v1029_v40 = vsel %vm238_vm8, %v1907_v35, 0.0 }
 0x14e   : > { %v1043_v42 = vadd.f32 %v1042_v32, %v1029_v40  ;;  %1912 = vtanh.f32 %v980_v36 }
 0x14f   : > { %v984_v43 = vpop.f32.mrb[50].mxu0 }
 0x150   : > { %v1909_v44 = vpop.eup %1908  ;;  %v985_v45 = vadd.f32 %v2375_v23, %v984_v43  ;;  %v1729_v34 = vpop.f32.mrb[51].mxu0 }
 0x151   : > { %v1030_v48 = vsel %vm239_vm9, %v1909_v44, 0.0 }
 0x152   : > { %v1044_v49 = vadd.f32 %v1043_v42, %v1030_v48  ;;  %1914 = vtanh.f32 %v985_v45 }
 0x153   : > { %v989_v50 = vpop.f32.mrb[52].mxu0 }
 0x154   : > { %v1911_v51 = vpop.eup %1910  ;;  %v990_v52 = vadd.f32 %v2375_v23, %v989_v50  ;;  %v1732_v53 = vpop.f32.mrb[53].mxu0 }
 0x155   : > { %v1031_v57 = vsel %vm240_vm10, %v1911_v51, 0.0 }
 0x156   : > { %v1045_v60 = vadd.f32 %v1044_v49, %v1031_v57  ;;  %1916 = vtanh.f32 %v990_v52 }
 0x157   : > { %v994_v61 = vpop.f32.mrb[54].mxu0 }
 0x158   : > { %v1913_v62 = vpop.eup %1912  ;;  %v995_v0 = vadd.f32 %v2375_v23, %v994_v61  ;;  %v1735_v2 = vpop.f32.mrb[55].mxu0 }
 0x159   : > { %v699_v56 = vpop.f32.mrb[0].mxu1  ;;  %v1032_v4 = vsel %vm241_vm11, %v1913_v62, 0.0 }
 0x15a   : > { %v700_v58 = vadd.f32 %v2375_v23, %v699_v56  ;;  %v1638_v59 = vpop.f32.mrb[1].mxu1  ;;  %v1046_v10 = vadd.f32 %v1045_v60, %v1032_v4 }
 0x15b   : > { %v999_v11 = vpop.f32.mrb[56].mxu0 }
 0x15c   : > { %1918 = vtanh.f32 %v700_v58  ;;  %v1915_v12 = vpop.eup %1914  ;;  %v1000_v13 = vadd.f32 %v2375_v23, %v999_v11  ;;  %v1738_v14 = vpop.f32.mrb[57].mxu0 }
 0x15d   : > { %v704_v3 = vpop.f32.mrb[2].mxu1  ;;  %1920 = vtanh.f32 %v995_v0  ;;  %v1033_v17 = vsel %vm242_vm12, %v1915_v12, 0.0 }
 0x15e   : > { %v705_v5 = vadd.f32 %v2375_v23, %v704_v3  ;;  %v1641_v7 = vpop.f32.mrb[3].mxu1  ;;  %v1047_v21 = vadd.f32 %v1046_v10, %v1033_v17 }
 0x15f   : > { %v1004_v22 = vpop.f32.mrb[58].mxu0 }
 0x160   : > { %1922 = vtanh.f32 %v705_v5  ;;  %v1917_v25 = vpop.eup %1916  ;;  %v1005_v27 = vadd.f32 %v2375_v23, %v1004_v22  ;;  %v1741_v28 = vpop.f32.mrb[59].mxu0 }
 0x161   : > { %v709_v16 = vpop.f32.mrb[4].mxu1  ;;  %1924 = vtanh.f32 %v1000_v13  ;;  %v1034_v32 = vsel %vm243_vm13, %v1917_v25, 0.0 }
 0x162   : > { %v710_v18 = vadd.f32 %v2375_v23, %v709_v16  ;;  %v1644_v20 = vpop.f32.mrb[5].mxu1  ;;  %v1048_v36 = vadd.f32 %v1047_v21, %v1034_v32 }
 0x164   : > { %1926 = vtanh.f32 %v710_v18 }
 0x165   : > { %v714_v30 = vpop.f32.mrb[6].mxu1  ;;  %1928 = vtanh.f32 %v1005_v27 }
 0x166   : > { %v715_v33 = vadd.f32 %v2375_v23, %v714_v30  ;;  %v1647_v35 = vpop.f32.mrb[7].mxu1  ;;  %v1919_v39 = vpop.eup %1918 }
 0x167   : > { %v1921_v40 = vpop.eup %1920  ;;  %v788_v49 = vsel %vm232_vm2, %v1919_v39, 0.0 }
 0x168   : > { %1930 = vtanh.f32 %v715_v33  ;;  %v1035_v43 = vsel %vm244_vm14, %v1921_v40, 0.0 }
 0x169   : > { %v719_v42 = vpop.f32.mrb[8].mxu1  ;;  %v1049_v48 = vadd.f32 %v1048_v36, %v1035_v43 }
 0x16a   : > { %v1923_v44 = vpop.eup %1922  ;;  %v720_v45 = vadd.f32 %v2375_v23, %v719_v42  ;;  %v1650_v34 = vpop.f32.mrb[9].mxu1 }
 0x16b   : > { %v789_v50 = vsel %vm233_vm3, %v1923_v44, 0.0  ;;  %v1925_v51 = vpop.eup %1924 }
 0x16c   : > { %v803_v52 = vadd.f32 %v789_v50, %v788_v49  ;;  %1932 = vtanh.f32 %v720_v45  ;;  %v1036_v56 = vsel %vm245_vm15, %v1925_v51, 0.0 }
 0x16d   : > { %v724_v53 = vpop.f32.mrb[10].mxu1  ;;  %v1050_v60 = vadd.f32 %v1049_v48, %v1036_v56 }
 0x16e   : > { %v1927_v57 = vpop.eup %1926  ;;  %v725_v58 = vadd.f32 %v2375_v23, %v724_v53  ;;  %v1653_v59 = vpop.f32.mrb[11].mxu1 }
 0x16f   : > { %v790_v61 = vsel %vm234_vm4, %v1927_v57, 0.0  ;;  %v1929_v62 = vpop.eup %1928 }
 0x170   : > { %v804_v0 = vadd.f32 %v803_v52, %v790_v61  ;;  %1934 = vtanh.f32 %v725_v58  ;;  %v1037_v3 = vsel %vm246_vm0, %v1929_v62, 0.0 }
 0x171   : > { %v729_v2 = vpop.f32.mrb[12].mxu1  ;;  %v2573_v10 = vadd.f32 %v1050_v60, %v1037_v3 }
 0x172   : > { %v1931_v4 = vpop.eup %1930  ;;  %v730_v5 = vadd.f32 %v2375_v23, %v729_v2  ;;  %v1656_v7 = vpop.f32.mrb[13].mxu1 }
 0x173   : > { %v791_v11 = vsel %vm235_vm5, %v1931_v4, 0.0 }
 0x174   : > { %v805_v12 = vadd.f32 %v804_v0, %v791_v11  ;;  %1936 = vtanh.f32 %v730_v5 }
 0x175   : > { %v734_v13 = vpop.f32.mrb[14].mxu1 }
 0x176   : > { %v1933_v14 = vpop.eup %1932  ;;  %v735_v16 = vadd.f32 %v2375_v23, %v734_v13  ;;  %v1659_v17 = vpop.f32.mrb[15].mxu1 }
 0x177   : > { %v792_v18 = vsel %vm236_vm6, %v1933_v14, 0.0 }
 0x178   : > { %v806_v20 = vadd.f32 %v805_v12, %v792_v18  ;;  %1938 = vtanh.f32 %v735_v16 }
 0x179   : > { %v739_v21 = vpop.f32.mrb[16].mxu1 }
 0x17a   : > { %v1935_v22 = vpop.eup %1934  ;;  %v740_v25 = vadd.f32 %v2375_v23, %v739_v21  ;;  %v1662_v27 = vpop.f32.mrb[17].mxu1 }
 0x17b   : > { %v793_v28 = vsel %vm237_vm7, %v1935_v22, 0.0  ;;  %v567_v27 = vrot.slane %v2516_v46, 4 }
 0x17c   : > { %v807_v30 = vadd.f32 %v806_v20, %v793_v28  ;;  %1940 = vtanh.f32 %v740_v25 }
 0x17d   : > { %v744_v32 = vpop.f32.mrb[18].mxu1 }
 0x17e   : > { %v1937_v33 = vpop.eup %1936  ;;  %v745_v35 = vadd.f32 %v2375_v23, %v744_v32  ;;  %v1665_v36 = vpop.f32.mrb[19].mxu1 }
 0x17f   : > { %v794_v39 = vsel %vm238_vm8, %v1937_v33, 0.0 }
 0x180   : > { %v808_v40 = vadd.f32 %v807_v30, %v794_v39  ;;  %1942 = vtanh.f32 %v745_v35  ;;  %v568_v39 = vadd.f32 %v567_v27, %v2516_v46 }
 0x181   : > { %v749_v42 = vpop.f32.mrb[20].mxu1 }
 0x182   : > { %v1939_v43 = vpop.eup %1938  ;;  %v750_v44 = vadd.f32 %v2375_v23, %v749_v42  ;;  %v1668_v45 = vpop.f32.mrb[21].mxu1 }
 0x183   : > { %v795_v34 = vsel %vm239_vm9, %v1939_v43, 0.0 }
 0x184   : > { %v809_v48 = vadd.f32 %v808_v40, %v795_v34  ;;  %1944 = vtanh.f32 %v750_v44 }
 0x185   : > { %v754_v49 = vpop.f32.mrb[22].mxu1 }
 0x186   : > { %v1941_v50 = vpop.eup %1940  ;;  %v755_v51 = vadd.f32 %v2375_v23, %v754_v49  ;;  %v1671_v52 = vpop.f32.mrb[23].mxu1 }
 0x187   : > { %v796_v53 = vsel %vm240_vm10, %v1941_v50, 0.0 }
 0x188   : > { %v810_v56 = vadd.f32 %v809_v48, %v796_v53  ;;  %1946 = vtanh.f32 %v755_v51  ;;  %v569_v48 = vrot.slane %v568_v39, 2 }
 0x189   : > { %v759_v57 = vpop.f32.mrb[24].mxu1 }
 0x18a   : > { %v1943_v58 = vpop.eup %1942  ;;  %v760_v59 = vadd.f32 %v2375_v23, %v759_v57  ;;  %v1674_v60 = vpop.f32.mrb[25].mxu1  ;;  %v570_v46 = vadd.f32 %v569_v48, %v568_v39 }
 0x18b   : > { %v797_v61 = vsel %vm241_vm11, %v1943_v58, 0.0 }
 0x18c   : > { %v811_v62 = vadd.f32 %v810_v56, %v797_v61  ;;  %1948 = vtanh.f32 %v760_v59 }
 0x18d   : > { %v764_v0 = vpop.f32.mrb[26].mxu1 }
 0x18e   : > { %v1945_v2 = vpop.eup %1944  ;;  %v765_v3 = vadd.f32 %v2375_v23, %v764_v0  ;;  %v1677_v4 = vpop.f32.mrb[27].mxu1 }
 0x18f   : > { %v798_v5 = vsel %vm242_vm12, %v1945_v2, 0.0 }
 0x190   : > { %v812_v7 = vadd.f32 %v811_v62, %v798_v5  ;;  %1950 = vtanh.f32 %v765_v3  ;;  %v571_v3 = vrot.slane %v570_v46, 1 }
 0x191   : > { %v769_v11 = vpop.f32.mrb[28].mxu1 }
 0x192   : > { %v1947_v12 = vpop.eup %1946  ;;  %v770_v13 = vadd.f32 %v2375_v23, %v769_v11  ;;  %v1680_v14 = vpop.f32.mrb[29].mxu1 }
 0x193   : > { %v799_v16 = vsel %vm243_vm13, %v1947_v12, 0.0 }
 0x194   : > { %v813_v17 = vadd.f32 %v812_v7, %v799_v16  ;;  %1952 = vtanh.f32 %v770_v13 }
 0x195   : > { %v1184_v18 = vpop.f32.mrb[30].mxu1 }
 0x196   : > { %v1949_v20 = vpop.eup %1948  ;;  %v1185_v21 = vadd.f32 %v2375_v23, %v1184_v18  ;;  %v1760_v22 = vpop.f32.mrb[31].mxu1 }
 0x197   : > { %v800_v25 = vsel %vm244_vm14, %v1949_v20, 0.0 }
 0x198   : > { %v814_v28 = vadd.f32 %v813_v17, %v800_v25  ;;  %1954 = vtanh.f32 %v1185_v21  ;;  %v2621_v17 = vadd.f32 %v571_v3, %v570_v46 }
 0x199   : > { %v1189_v30 = vpop.f32.mrb[32].mxu1 }
 0x19a   : > { %v1951_v32 = vpop.eup %1950  ;;  %v1190_v33 = vadd.f32 %v2375_v23, %v1189_v30  ;;  %v1763_v35 = vpop.f32.mrb[33].mxu1 }
 0x19b   : > { %v801_v36 = vsel %vm245_vm15, %v1951_v32, 0.0 }
 0x19c   : > { %v815_v40 = vadd.f32 %v814_v28, %v801_v36  ;;  %1956 = vtanh.f32 %v1190_v33 }
 0x19d   : > { %v1194_v42 = vpop.f32.mrb[34].mxu1 }
 0x19e   : > { %v1953_v43 = vpop.eup %1952  ;;  %v1195_v44 = vadd.f32 %v2375_v23, %v1194_v42  ;;  %v1766_v45 = vpop.f32.mrb[35].mxu1 }
 0x19f   : > { %v802_v34 = vsel %vm246_vm0, %v1953_v43, 0.0 }
 0x1a0   : > { %v816_v49 = vadd.f32 %v815_v40, %v802_v34  ;;  %1958 = vtanh.f32 %v1195_v44 }
 0x1a1   : > { %v1199_v50 = vpop.f32.mrb[36].mxu1 }
 0x1a2   : > { %v817_v51 = vrot.slane %v816_v49, 4  ;;  %v1200_v52 = vadd.f32 %v2375_v23, %v1199_v50  ;;  %v1769_v53 = vpop.f32.mrb[37].mxu1  ;;  %v1955_v56 = vpop.eup %1954 }
 0x1a3   : > { %v1273_v0 = vsel %vm232_vm2, %v1955_v56, 0.0 }
 0x1a4   : > { %v818_v57 = vadd.f32 %v817_v51, %v816_v49  ;;  %1960 = vtanh.f32 %v1200_v52 }
 0x1a5   : > { %v1204_v58 = vpop.f32.mrb[38].mxu1 }
 0x1a6   : > { %v1957_v59 = vpop.eup %1956  ;;  %v819_v60 = vrot.slane %v818_v57, 2  ;;  %v1205_v61 = vadd.f32 %v2375_v23, %v1204_v58  ;;  %v1772_v62 = vpop.f32.mrb[39].mxu1 }
 0x1a7   : > { %v1274_v2 = vsel %vm233_vm3, %v1957_v59, 0.0 }
 0x1a8   : > { %v820_v4 = vadd.f32 %v819_v60, %v818_v57  ;;  %v1288_v5 = vadd.f32 %v1274_v2, %v1273_v0  ;;  %1962 = vtanh.f32 %v1205_v61 }
 0x1a9   : > { %v1209_v7 = vpop.f32.mrb[40].mxu1 }
 0x1aa   : > { %v1959_v11 = vpop.eup %1958  ;;  %v821_v12 = vrot.slane %v820_v4, 1  ;;  %v1210_v13 = vadd.f32 %v2375_v23, %v1209_v7  ;;  %v1775_v14 = vpop.f32.mrb[41].mxu1 }
 0x1ab   : > { %v1275_v16 = vsel %vm234_vm4, %v1959_v11, 0.0 }
 0x1ac   : > { %v2623_v38 = vadd.f32 %v821_v12, %v820_v4  ;;  %v1289_v18 = vadd.f32 %v1288_v5, %v1275_v16  ;;  %1964 = vtanh.f32 %v1210_v13 }
 0x1ad   : > { %v1214_v41 = vpop.f32.mrb[42].mxu1 }
 0x1ae   : > { %v1961_v20 = vpop.eup %1960  ;;  %v1312_v21 = vcombine.low %v2621_v17, %v2623_v38  ;;  %v1215_v22 = vadd.f32 %v2375_v23, %v1214_v41  ;;  %v1778_v25 = vpop.f32.mrb[43].mxu1 }
 0x1af   : > { %v1276_v27 = vsel %vm235_vm5, %v1961_v20, 0.0 }
 0x1b0   : > { %v1290_v28 = vadd.f32 %v1289_v18, %v1276_v27  ;;  %1966 = vtanh.f32 %v1215_v22  ;;  %v1052_v27 = vrot.slane %v2573_v10, 4 }
 0x1b1   : > { %v1219_v47 = vpop.f32.mrb[44].mxu1 }
 0x1b2   : > { %v1963_v30 = vpop.eup %1962  ;;  %v1220_v32 = vadd.f32 %v2375_v23, %v1219_v47  ;;  %v1781_v33 = vpop.f32.mrb[45].mxu1 }
 0x1b3   : > { %v1277_v35 = vsel %vm236_vm6, %v1963_v30, 0.0 }
 0x1b4   : > { %v1291_v36 = vadd.f32 %v1290_v28, %v1277_v35  ;;  %1968 = vtanh.f32 %v1220_v32 }
 0x1b5   : > { %v1224_v39 = vpop.f32.mrb[46].mxu1 }
 0x1b6   : > { %v1965_v40 = vpop.eup %1964  ;;  %v1225_v42 = vadd.f32 %v2375_v23, %v1224_v39  ;;  %v1784_v43 = vpop.f32.mrb[47].mxu1 }
 0x1b7   : > { %v1278_v54 = vsel %vm237_vm7, %v1965_v40, 0.0 }
 0x1b8   : > { %v1292_v44 = vadd.f32 %v1291_v36, %v1278_v54  ;;  %1970 = vtanh.f32 %v1225_v42  ;;  %v1996_v36 = vmov 1966171168  }
 0x1b9   : > { %v1229_v45 = vpop.f32.mrb[48].mxu1  ;;  %v1315_v39 = vunpack.c.l.s4 %v1996_v36 }
 0x1ba   : > { %v1967_v34 = vpop.eup %1966  ;;  %v1230_v48 = vadd.f32 %v2375_v23, %v1229_v45  ;;  %v1787_v49 = vpop.f32.mrb[49].mxu1 }
 0x1bb   : > { %v1279_v63 = vsel %vm238_vm8, %v1967_v34, 0.0  ;;  %v1316_v54 = vunpack.c.0.s8 %v1315_v39 }
 0x1bc   : > { %v1293_v50 = vadd.f32 %v1292_v44, %v1279_v63  ;;  %1972 = vtanh.f32 %v1230_v48 }
 0x1bd   : > { %v1234_v51 = vpop.f32.mrb[50].mxu1 }
 0x1be   : > { %v1969_v52 = vpop.eup %1968  ;;  %v1235_v53 = vadd.f32 %v2375_v23, %v1234_v51  ;;  %v1790_v56 = vpop.f32.mrb[51].mxu1 }
 0x1bf   : > { %v1280_v9 = vsel %vm239_vm9, %v1969_v52, 0.0 }
 0x1c0   : > { %v1294_v46 = vadd.f32 %v1293_v50, %v1280_v9  ;;  %1974 = vtanh.f32 %v1235_v53 }
 0x1c1   : > { %v1239_v57 = vpop.f32.mrb[52].mxu1 }
 0x1c2   : > { %v1971_v58 = vpop.eup %1970  ;;  %v1240_v59 = vadd.f32 %v2375_v23, %v1239_v57  ;;  %v1793_v60 = vpop.f32.mrb[53].mxu1 }
 0x1c3   : > { %v1281_v15 = vsel %vm240_vm10, %v1971_v58, 0.0 }
 0x1c4   : > { %v1295_v61 = vadd.f32 %v1294_v46, %v1281_v15  ;;  %1976 = vtanh.f32 %v1240_v59 }
 0x1c5   : > { %v1244_v62 = vpop.f32.mrb[54].mxu1 }
 0x1c6   : > { %v1973_v0 = vpop.eup %1972  ;;  %v1245_v2 = vadd.f32 %v2375_v23, %v1244_v62  ;;  %v1796_v3 = vpop.f32.mrb[55].mxu1 }
 0x1c7   : > { %v1282_v26 = vsel %vm241_vm11, %v1973_v0, 0.0 }
 0x1c8   : > { %v1296_v4 = vadd.f32 %v1295_v61, %v1282_v26  ;;  %1978 = vtanh.f32 %v1245_v2 }
 0x1c9   : > { %v1249_v5 = vpop.f32.mrb[56].mxu1 }
 0x1ca   : > { %v1975_v7 = vpop.eup %1974  ;;  %v1250_v11 = vadd.f32 %v2375_v23, %v1249_v5  ;;  %v1799_v12 = vpop.f32.mrb[57].mxu1 }
 0x1cb   : > { %v1283_v37 = vsel %vm242_vm12, %v1975_v7, 0.0 }
 0x1cc   : > { %v1297_v13 = vadd.f32 %v1296_v4, %v1283_v37  ;;  %1980 = vtanh.f32 %v1250_v11 }
 0x1cd   : > { %v1254_v14 = vpop.f32.mrb[58].mxu1 }
 0x1ce   : > { %v1977_v16 = vpop.eup %1976  ;;  %v1255_v18 = vadd.f32 %v2375_v23, %v1254_v14  ;;  %v1802_v41 = vpop.f32.mrb[59].mxu1  ;;  %v1053_v23 = vadd.f32 %v1052_v27, %v2573_v10  ;;  %v1319_v10 = vsub.s32 %v1316_v54, %v2384_v29 }
 0x1cf   : > { %v1284_v6 = vsel %vm243_vm13, %v1977_v16, 0.0 }
 0x1d0   : > { %v1298_v20 = vadd.f32 %v1297_v13, %v1284_v6  ;;  %1982 = vtanh.f32 %v1255_v18  ;;  %v1054_v33 = vrot.slane %v1053_v23, 2  ;;  %v1320_v49 = vrot.slane %v1312_v21, %v1319_v10 }
 0x1d2   : > { %v1979_v22 = vpop.eup %1978  ;;  %v1055_v40 = vadd.f32 %v1054_v33, %v1053_v23 }
 0x1d3   : > { %v1285_v25 = vsel %vm244_vm14, %v1979_v22, 0.0 }
 0x1d4   : > { %v1299_v55 = vadd.f32 %v1298_v20, %v1285_v25  ;;  %v1056_v19 = vrot.slane %v1055_v40, 1 }
 0x1d6   : > { %v1981_v28 = vpop.eup %1980  ;;  %v1057_v34 = vadd.f32 %v1056_v19, %v1055_v40 }
 0x1d7   : > { %v1286_v47 = vsel %vm245_vm15, %v1981_v28, 0.0 }
 0x1d8   : > { %v1300_v30 = vadd.f32 %v1299_v55, %v1286_v47 }
 0x1da   : > { %v1983_v32 = vpop.eup %1982 }
 0x1db   : > { %v1287_v1 = vsel %vm246_vm0, %v1983_v32, 0.0 }
 0x1dc   : > { %v1301_v35 = vadd.f32 %v1300_v30, %v1287_v1 }
 0x1de   : > { %v1302_v8 = vrot.slane %v1301_v35, 4 }
 0x1e0   : > { %v1303_v42 = vadd.f32 %v1302_v8, %v1301_v35 }
 0x1e2   : > { %v1304_v43 = vrot.slane %v1303_v42, 2 }
 0x1e4   : > { %v1305_v44 = vadd.f32 %v1304_v43, %v1303_v42 }
 0x1e6   : > { %v1306_v45 = vrot.slane %v1305_v44, 1 }
 0x1e8   : > { %v1307_v31 = vadd.f32 %v1306_v45, %v1305_v44 }
 0x1ea   : > { %v1313_v48 = vcombine.low %v1057_v34, %v1307_v31 }
 0x1ec   : > { %v1327_v63 = vrot.slane %v1313_v48, %v1319_v10 }
 0x1ee   : > { %v1328_v50 = vcombine.low %v1320_v49, %v1327_v63 }
 0x1f0   : > { %v1335_v51 = vrot.slane %v1328_v50, %v1319_v10 }
 0x1f2   : > { %1341 = vst.msk [vmem:[%s198_s17] sm:$0xf] %vm1339_vm1, %v1335_v51 }
 0x1f3 PF: > { %s13_s12 = sadd.s32 1, %s1990_s12  }
 0x1f4   : > { %p10_p5 = scmp.ge.s32.totalorder %s13_s12, 11  }
 0x1f6   :  { %12 = sbr.rel (!%p10_p5) target bundleno = 1 (0x1), region = 62 }

</bundles_post_ra>
